<compile_context>
chip_gen: v5e
topology: v5e:2x2
jax: 0.10.0
libtpu: 0.0.40
codegen_flags: <defaults>
</compile_context>

<pallas_src>
import functools

import jax
import jax.numpy as jnp
from jax.experimental import pallas as pl
from jax.experimental.pallas import tpu as pltpu

LANE = 128  # lane-dense padding width for every activation / weight block


# ---------------------------------------------------------------------------
# Fused Pallas kernel: emb-LN -> QKV -> attention -> proj+LN -> FFN+LN -> head
# ---------------------------------------------------------------------------

def fused_model4s_kernel(act_ref, w_ref, p_ref, hidden_ref, head_ref,
                         *, B, S, H, nH, Dh):
    f32 = jnp.float32
    M = B * S

    # --- packed-slab row / block indices (static Python ints) ---------------
    ROW_EMB_G, ROW_EMB_B = 0, 1
    ROW_BQ = 2
    ROW_BK = 2 + nH
    ROW_BV = 2 + 2 * nH
    ROW_BO = 2 + 3 * nH
    ROW_ALN_G, ROW_ALN_B = ROW_BO + 1, ROW_BO + 2
    ROW_BF1, ROW_BF2 = ROW_BO + 3, ROW_BO + 4
    ROW_FLN_G, ROW_FLN_B = ROW_BO + 5, ROW_BO + 6
    ROW_BHEAD = ROW_BO + 7

    BLK_Q, BLK_K, BLK_V = 0, nH, 2 * nH
    BLK_O = 3 * nH            # occupies nH consecutive 128-row blocks
    BLK_F1 = 4 * nH
    BLK_F2 = 4 * nH + 1
    BLK_HD = 4 * nH + 2

    def prow(i):              # [1, 128] bias / LN row (aligned VMEM read)
        return p_ref[i:i + 1, :]

    def wblk(i, n=1):         # [n*128, 128] weight block (128-aligned view)
        return w_ref[i * LANE:(i + n) * LANE, :]

    def layernorm(y, g_row, b_row):
        # y is [M, 128] with real data in the first H lanes and exact zeros in
        # the pad lanes, so 128-lane sums equal H-lane sums; divide by H.
        inv = 1.0 / H
        mu = jnp.sum(y, axis=-1, keepdims=True) * inv
        var = jnp.maximum(
            jnp.sum(y * y, axis=-1, keepdims=True) * inv - mu * mu, 0.0)
        # gamma / beta are zero in the pad lanes -> output stays zero-padded.
        return (y - mu) * jax.lax.rsqrt(var + 1e-12) * prow(g_row) + prow(b_row)

    # --- embedding LayerNorm (eps=1e-12, BERT) -------------------------------
    x = layernorm(act_ref[0:M, :], ROW_EMB_G, ROW_EMB_B)            # [M, 128]

    # --- per-head Q/K/V projections (1/sqrt(Dh) folded into Q weight/bias) ---
    q_h, k_h, v_h = [], [], []
    for h in range(nH):
        q_h.append(jnp.dot(x, wblk(BLK_Q + h),
                           preferred_element_type=f32) + prow(ROW_BQ + h))
        k_h.append(jnp.dot(x, wblk(BLK_K + h),
                           preferred_element_type=f32) + prow(ROW_BK + h))
        v_h.append(jnp.dot(x, wblk(BLK_V + h),
                           preferred_element_type=f32) + prow(ROW_BV + h))

    # --- self-attention, per (batch, head), fully VMEM-resident --------------
    batch_ctx = []
    for b in range(B):
        r0 = b * S
        add_mask = act_ref[M + b:M + b + 1, 0:S]                    # [1, S]
        head_ctx = []
        for h in range(nH):
            q = q_h[h][r0:r0 + S, :]                                # [S, 128]
            k = k_h[h][r0:r0 + S, :]
            v = v_h[h][r0:r0 + S, :]
            s = jax.lax.dot_general(q, k, (((1,), (1,)), ((), ())),
                                    preferred_element_type=f32)     # [S, S]
            s = s + add_mask
            m = jnp.max(s, axis=-1, keepdims=True)
            e = jnp.exp(s - m)
            denom = jnp.sum(e, axis=-1, keepdims=True)
            p = e * pl.reciprocal(denom, approx=True)               # EUP slot
            head_ctx.append(jnp.dot(p, v, preferred_element_type=f32))
        # 128-lane-aligned concat (no cross-lane shifts)
        batch_ctx.append(jnp.concatenate(head_ctx, axis=1))         # [S, nH*128]
    ctx = jnp.concatenate(batch_ctx, axis=0)                        # [M, nH*128]

    # --- output projection + residual + LayerNorm ----------------------------
    attn_out = jnp.dot(ctx, wblk(BLK_O, n=nH),
                       preferred_element_type=f32) + prow(ROW_BO)
    x = layernorm(attn_out + x, ROW_ALN_G, ROW_ALN_B)

    # --- feed-forward + residual + LayerNorm ---------------------------------
    h1 = jnp.dot(x, wblk(BLK_F1), preferred_element_type=f32) + prow(ROW_BF1)
    h1 = jax.nn.gelu(h1)   # TODO(synk): HF BERT uses exact erf GELU; tanh approx here
    ffn_out = jnp.dot(h1, wblk(BLK_F2), preferred_element_type=f32) + prow(ROW_BF2)
    x = layernorm(ffn_out + x, ROW_FLN_G, ROW_FLN_B)

    hidden_ref[...] = x    # lane-dense [M, 128]; real data in first H lanes

    # --- Model4s head: dropout (inference identity) -> linear -> sigmoid^2 ---
    # TODO(synk): training-mode stochastic dropout not wired in.
    z = jnp.dot(x, wblk(BLK_HD), preferred_element_type=f32) + prow(ROW_BHEAD)
    sgm = jax.nn.sigmoid(z)
    head_ref[...] = sgm * sgm


# ---------------------------------------------------------------------------
# Parameters (deterministic in-script init; synthetic mini-BERT)
# ---------------------------------------------------------------------------

def init_params(key, vocab=50, max_pos=64, n_types=2, hidden=32, n_heads=2,
                ffn=64, n_classes=2):
    ks = jax.random.split(key, 16)
    std = 0.02
    f32 = jnp.float32
    p = {
        "word_emb": jax.random.normal(ks[0], (vocab, hidden), f32) * std,
        "pos_emb":  jax.random.normal(ks[1], (max_pos, hidden), f32) * std,
        "type_emb": jax.random.normal(ks[2], (n_types, hidden), f32) * std,
        "emb_ln_g": jnp.ones((1, hidden), f32),
        "emb_ln_b": jnp.zeros((1, hidden), f32),
        "wq": jax.random.normal(ks[3], (hidden, hidden), f32) * std,
        "bq": jnp.zeros((1, hidden), f32),
        "wk": jax.random.normal(ks[4], (hidden, hidden), f32) * std,
        "bk": jnp.zeros((1, hidden), f32),
        "wv": jax.random.normal(ks[5], (hidden, hidden), f32) * std,
        "bv": jnp.zeros((1, hidden), f32),
        "wo": jax.random.normal(ks[6], (hidden, hidden), f32) * std,
        "bo": jnp.zeros((1, hidden), f32),
        "attn_ln_g": jnp.ones((1, hidden), f32),
        "attn_ln_b": jnp.zeros((1, hidden), f32),
        "w_ffn1": jax.random.normal(ks[7], (hidden, ffn), f32) * std,
        "b_ffn1": jnp.zeros((1, ffn), f32),
        "w_ffn2": jax.random.normal(ks[8], (ffn, hidden), f32) * std,
        "b_ffn2": jnp.zeros((1, hidden), f32),
        "ffn_ln_g": jnp.ones((1, hidden), f32),     # <-- was missing (KeyError)
        "ffn_ln_b": jnp.zeros((1, hidden), f32),    # <-- was missing (KeyError)
        # Model4s head: nn.Linear(hidden, 2, bias=True)
        "w_head": jax.random.normal(ks[9], (hidden, n_classes), f32) * std,
        "b_head": jnp.zeros((1, n_classes), f32),
    }
    p["n_heads"] = n_heads
    return p


def prepare_params(p):
    """One-time repack: all weights -> one [R,128] slab, all biases/LN -> one
    [r,128] slab.  Per-head Q/K/V blocks are padded to 128 lanes, the Q scale
    1/sqrt(Dh) is folded in, and the out-projection gets matching zero rows."""
    f32 = jnp.float32
    H = p["wq"].shape[0]
    nH = p["n_heads"]
    Dh = H // nH
    ffn = p["w_ffn1"].shape[1]
    n_classes = p["w_head"].shape[1]
    assert H <= LANE and ffn <= LANE and Dh <= LANE and n_classes <= LANE

    scale = 1.0 / (Dh ** 0.5)

    def pad_block(w):   # [r, c] -> [128, 128], zero padded
        return jnp.pad(w, ((0, LANE - w.shape[0]), (0, LANE - w.shape[1])))

    def pad_row(v):     # [1, c] -> [1, 128], zero padded
        return jnp.pad(v, ((0, 0), (0, LANE - v.shape[1])))

    blocks = []
    for h in range(nH):                                       # Q (scale folded)
        blocks.append(pad_block(p["wq"][:, h * Dh:(h + 1) * Dh] * scale))
    for h in range(nH):                                       # K
        blocks.append(pad_block(p["wk"][:, h * Dh:(h + 1) * Dh]))
    for h in range(nH):                                       # V
        blocks.append(pad_block(p["wv"][:, h * Dh:(h + 1) * Dh]))
    # out-projection: [nH*128, 128]; row (h*128+d) <- original row (h*Dh+d)
    wo_pad = jnp.zeros((nH * LANE, LANE), f32)
    for h in range(nH):
        wo_pad = wo_pad.at[h * LANE:h * LANE + Dh, :H].set(
            p["wo"][h * Dh:(h + 1) * Dh, :])
    blocks.append(wo_pad)
    blocks.append(pad_block(p["w_ffn1"]))
    blocks.append(pad_block(p["w_ffn2"]))
    blocks.append(pad_block(p["w_head"]))
    w_slab = jnp.concatenate(blocks, axis=0)                  # [(4nH+3)*128, 128]

    rows = [pad_row(p["emb_ln_g"]), pad_row(p["emb_ln_b"])]
    for h in range(nH):
        rows.append(pad_row(p["bq"][:, h * Dh:(h + 1) * Dh] * scale))
    for h in range(nH):
        rows.append(pad_row(p["bk"][:, h * Dh:(h + 1) * Dh]))
    for h in range(nH):
        rows.append(pad_row(p["bv"][:, h * Dh:(h + 1) * Dh]))
    rows += [pad_row(p["bo"]),
             pad_row(p["attn_ln_g"]), pad_row(p["attn_ln_b"]),
             pad_row(p["b_ffn1"]), pad_row(p["b_ffn2"]),
             pad_row(p["ffn_ln_g"]), pad_row(p["ffn_ln_b"]),
             pad_row(p["b_head"])]
    p_slab = jnp.concatenate(rows, axis=0)                    # [10+3nH, 128]

    return {
        "word_emb": p["word_emb"], "pos_emb": p["pos_emb"],
        "type_emb": p["type_emb"],
        "w_slab": w_slab, "p_slab": p_slab,
        "n_heads": nH, "hidden": H, "n_classes": n_classes,
    }


# ---------------------------------------------------------------------------
# Forward pass: embedding gather (glue) + one fused Pallas kernel (3 inputs)
# ---------------------------------------------------------------------------

def _full_spec(shape):
    nd = len(shape)
    return pl.BlockSpec(shape, lambda i, _nd=nd: (0,) * _nd)


def model4s_forward(params, input_ids, input_mask, segment_ids):
    f32 = jnp.float32
    B, S = input_ids.shape
    H = params["hidden"]
    nH = params["n_heads"]
    Dh = H // nH
    n_classes = params["n_classes"]
    M = B * S
    assert S <= LANE

    # --- BERT embeddings (table gather is XLA glue) --------------------------
    # TODO(synk): could move in-kernel via PrefetchScalarGridSpec + pl.Element.
    pos = jnp.arange(S)
    emb = (jnp.take(params["word_emb"], input_ids, axis=0)
           + jnp.take(params["pos_emb"], pos, axis=0)[None, :, :]
           + jnp.take(params["type_emb"], segment_ids, axis=0)).astype(f32)
    emb = emb.reshape(M, H)

    # additive attention mask: 0 on real tokens, -1e4 on padding
    neg_mask = (1.0 - input_mask.astype(f32)) * -10000.0            # [B, S]

    # single lane-dense activation slab: M embedding rows + B mask rows
    act = jnp.concatenate(
        [jnp.pad(emb, ((0, 0), (0, LANE - H))),
         jnp.pad(neg_mask, ((0, 0), (0, LANE - S)))], axis=0)       # [M+B, 128]

    kernel = functools.partial(fused_model4s_kernel,
                               B=B, S=S, H=H, nH=nH, Dh=Dh)

    args = (act, params["w_slab"], params["p_slab"])                # 3 DMAs
    out_shapes = (jax.ShapeDtypeStruct((M, LANE), f32),   # hidden (lane-dense)
                  jax.ShapeDtypeStruct((M, LANE), f32))   # head   (lane-dense)

    hidden_pad, head_pad = pl.pallas_call(
        kernel,
        out_shape=out_shapes,
        grid=(1,),
        in_specs=[_full_spec(a.shape) for a in args],
        out_specs=[_full_spec(s.shape) for s in out_shapes],
        compiler_params=pltpu.CompilerParams(
            dimension_semantics=("arbitrary",)),
    )(*args)

    output = head_pad[:, :n_classes].reshape(B, S, n_classes)
    hidden_states = hidden_pad[:, :H].reshape(B, S, H)
    return output, hidden_states


# ---------------------------------------------------------------------------
# Demo
# ---------------------------------------------------------------------------

if __name__ == "__main__":
    key = jax.random.PRNGKey(0)
    k_param, k_ids, k_seg = jax.random.split(key, 3)

    B, S = 2, 8
    VOCAB = 50
    params = prepare_params(
        init_params(k_param, vocab=VOCAB, hidden=32, n_heads=2, ffn=64))

    input_ids = jax.random.randint(k_ids, (B, S), 0, VOCAB, dtype=jnp.int32)
    segment_ids = jax.random.randint(k_seg, (B, S), 0, 2, dtype=jnp.int32)
    # mask out the last 2 tokens of the second sequence
    input_mask = jnp.ones((B, S), dtype=jnp.int32).at[1, -2:].set(0)

    fwd = jax.jit(functools.partial(model4s_forward, params))
    output, hidden_states = fwd(input_ids, input_mask, segment_ids)
    jax.block_until_ready((output, hidden_states))

    assert output.shape == (B, S, 2), output.shape
    assert hidden_states.shape == (B, S, 32), hidden_states.shape
    assert bool(jnp.all((output >= 0.0) & (output <= 1.0)))
    assert bool(jnp.all(jnp.isfinite(output)))
    assert bool(jnp.all(jnp.isfinite(hidden_states)))

    print("KERNEL_OK")
</pallas_src>

<mosaic_0001>
module attributes {stable_mosaic.version = 11 : i64} {
  func.func @fused_model4s_kernel(%arg0: i32, %arg1: memref<18x128xf32, #tpu.memory_space<vmem>>, %arg2: memref<1408x128xf32, #tpu.memory_space<vmem>>, %arg3: memref<16x128xf32, #tpu.memory_space<vmem>>, %arg4: memref<16x128xf32, #tpu.memory_space<vmem>>, %arg5: memref<16x128xf32, #tpu.memory_space<vmem>>) attributes {dimension_semantics = [#tpu.dimension_semantics<arbitrary>], iteration_bounds = array<i64: 1>, scalar_prefetch = 0 : i64, scratch_operands = 0 : i64, tpu.core_type = #tpu.core_type<tc>, window_params = [{pipeline_mode = #tpu.pipeline_mode<synchronous>, transform_indices = @transform_0, window_bounds = array<i64: 18, 128>}, {pipeline_mode = #tpu.pipeline_mode<synchronous>, transform_indices = @transform_1, window_bounds = array<i64: 1408, 128>}, {pipeline_mode = #tpu.pipeline_mode<synchronous>, transform_indices = @transform_2, window_bounds = array<i64: 16, 128>}, {pipeline_mode = #tpu.pipeline_mode<synchronous>, transform_indices = @transform_3, window_bounds = array<i64: 16, 128>}, {pipeline_mode = #tpu.pipeline_mode<synchronous>, transform_indices = @transform_4, window_bounds = array<i64: 16, 128>}]} {
    %c0 = arith.constant 0 : index
    %c0_0 = arith.constant 0 : index
    %0 = vector.load %arg1[%c0, %c0_0] : memref<18x128xf32, #tpu.memory_space<vmem>>, vector<16x128xf32>
    %cst = arith.constant dense<0.000000e+00> : vector<16xf32>
    %1 = vector.multi_reduction <add>, %0, %cst [1] : vector<16x128xf32> to vector<16xf32>
    %2 = vector.shape_cast %1 : vector<16xf32> to vector<16x1xf32>
    %cst_1 = arith.constant 3.125000e-02 : f32
    %3 = vector.broadcast %cst_1 : f32 to vector<16x1xf32>
    %4 = arith.mulf %2, %3 : vector<16x1xf32>
    %5 = arith.mulf %0, %0 : vector<16x128xf32>
    %cst_2 = arith.constant dense<0.000000e+00> : vector<16xf32>
    %6 = vector.multi_reduction <add>, %5, %cst_2 [1] : vector<16x128xf32> to vector<16xf32>
    %7 = vector.shape_cast %6 : vector<16xf32> to vector<16x1xf32>
    %cst_3 = arith.constant 3.125000e-02 : f32
    %8 = vector.broadcast %cst_3 : f32 to vector<16x1xf32>
    %9 = arith.mulf %7, %8 : vector<16x1xf32>
    %10 = arith.mulf %4, %4 : vector<16x1xf32>
    %11 = arith.subf %9, %10 : vector<16x1xf32>
    %cst_4 = arith.constant 0.000000e+00 : f32
    %12 = vector.broadcast %cst_4 : f32 to vector<16x1xf32>
    %13 = arith.maximumf %11, %12 : vector<16x1xf32>
    %14 = vector.broadcast %4 : vector<16x1xf32> to vector<16x128xf32>
    %15 = arith.subf %0, %14 : vector<16x128xf32>
    %cst_5 = arith.constant 9.99999996E-13 : f32
    %16 = vector.broadcast %cst_5 : f32 to vector<16x1xf32>
    %17 = arith.addf %13, %16 : vector<16x1xf32>
    %18 = math.rsqrt %17 : vector<16x1xf32>
    %19 = vector.broadcast %18 : vector<16x1xf32> to vector<16x128xf32>
    %20 = arith.mulf %15, %19 : vector<16x128xf32>
    %c0_6 = arith.constant 0 : index
    %c0_7 = arith.constant 0 : index
    %21 = vector.load %arg3[%c0_6, %c0_7] : memref<16x128xf32, #tpu.memory_space<vmem>>, vector<1x128xf32>
    %22 = vector.broadcast %21 : vector<1x128xf32> to vector<16x128xf32>
    %23 = arith.mulf %20, %22 : vector<16x128xf32>
    %c1 = arith.constant 1 : index
    %c0_8 = arith.constant 0 : index
    %24 = vector.load %arg3[%c1, %c0_8] : memref<16x128xf32, #tpu.memory_space<vmem>>, vector<1x128xf32>
    %25 = vector.broadcast %24 : vector<1x128xf32> to vector<16x128xf32>
    %26 = arith.addf %23, %25 : vector<16x128xf32>
    %c0_9 = arith.constant 0 : index
    %c0_10 = arith.constant 0 : index
    %27 = vector.load %arg2[%c0_9, %c0_10] : memref<1408x128xf32, #tpu.memory_space<vmem>>, vector<128x128xf32>
    %cst_11 = arith.constant dense<0.000000e+00> : vector<16x128xf32>
    %28 = tpu.matmul %26, %27, %cst_11 {dimension_numbers = #tpu.dot_dimension_numbers<[1], [0], [0], [1], [0, 0, 1, 1], [], []>} : vector<16x128xf32>, vector<128x128xf32>, vector<16x128xf32> -> vector<16x128xf32>
    %c2 = arith.constant 2 : index
    %c0_12 = arith.constant 0 : index
    %29 = vector.load %arg3[%c2, %c0_12] : memref<16x128xf32, #tpu.memory_space<vmem>>, vector<1x128xf32>
    %30 = vector.broadcast %29 : vector<1x128xf32> to vector<16x128xf32>
    %31 = arith.addf %28, %30 : vector<16x128xf32>
    %c256 = arith.constant 256 : index
    %c0_13 = arith.constant 0 : index
    %32 = vector.load %arg2[%c256, %c0_13] : memref<1408x128xf32, #tpu.memory_space<vmem>>, vector<128x128xf32>
    %cst_14 = arith.constant dense<0.000000e+00> : vector<16x128xf32>
    %33 = tpu.matmul %26, %32, %cst_14 {dimension_numbers = #tpu.dot_dimension_numbers<[1], [0], [0], [1], [0, 0, 1, 1], [], []>} : vector<16x128xf32>, vector<128x128xf32>, vector<16x128xf32> -> vector<16x128xf32>
    %c4 = arith.constant 4 : index
    %c0_15 = arith.constant 0 : index
    %34 = vector.load %arg3[%c4, %c0_15] : memref<16x128xf32, #tpu.memory_space<vmem>>, vector<1x128xf32>
    %35 = vector.broadcast %34 : vector<1x128xf32> to vector<16x128xf32>
    %36 = arith.addf %33, %35 : vector<16x128xf32>
    %c512 = arith.constant 512 : index
    %c0_16 = arith.constant 0 : index
    %37 = vector.load %arg2[%c512, %c0_16] : memref<1408x128xf32, #tpu.memory_space<vmem>>, vector<128x128xf32>
    %cst_17 = arith.constant dense<0.000000e+00> : vector<16x128xf32>
    %38 = tpu.matmul %26, %37, %cst_17 {dimension_numbers = #tpu.dot_dimension_numbers<[1], [0], [0], [1], [0, 0, 1, 1], [], []>} : vector<16x128xf32>, vector<128x128xf32>, vector<16x128xf32> -> vector<16x128xf32>
    %c6 = arith.constant 6 : index
    %c0_18 = arith.constant 0 : index
    %39 = vector.load %arg3[%c6, %c0_18] : memref<16x128xf32, #tpu.memory_space<vmem>>, vector<1x128xf32>
    %40 = vector.broadcast %39 : vector<1x128xf32> to vector<16x128xf32>
    %41 = arith.addf %38, %40 : vector<16x128xf32>
    %c128 = arith.constant 128 : index
    %c0_19 = arith.constant 0 : index
    %42 = vector.load %arg2[%c128, %c0_19] : memref<1408x128xf32, #tpu.memory_space<vmem>>, vector<128x128xf32>
    %cst_20 = arith.constant dense<0.000000e+00> : vector<16x128xf32>
    %43 = tpu.matmul %26, %42, %cst_20 {dimension_numbers = #tpu.dot_dimension_numbers<[1], [0], [0], [1], [0, 0, 1, 1], [], []>} : vector<16x128xf32>, vector<128x128xf32>, vector<16x128xf32> -> vector<16x128xf32>
    %c3 = arith.constant 3 : index
    %c0_21 = arith.constant 0 : index
    %44 = vector.load %arg3[%c3, %c0_21] : memref<16x128xf32, #tpu.memory_space<vmem>>, vector<1x128xf32>
    %45 = vector.broadcast %44 : vector<1x128xf32> to vector<16x128xf32>
    %46 = arith.addf %43, %45 : vector<16x128xf32>
    %c384 = arith.constant 384 : index
    %c0_22 = arith.constant 0 : index
    %47 = vector.load %arg2[%c384, %c0_22] : memref<1408x128xf32, #tpu.memory_space<vmem>>, vector<128x128xf32>
    %cst_23 = arith.constant dense<0.000000e+00> : vector<16x128xf32>
    %48 = tpu.matmul %26, %47, %cst_23 {dimension_numbers = #tpu.dot_dimension_numbers<[1], [0], [0], [1], [0, 0, 1, 1], [], []>} : vector<16x128xf32>, vector<128x128xf32>, vector<16x128xf32> -> vector<16x128xf32>
    %c5 = arith.constant 5 : index
    %c0_24 = arith.constant 0 : index
    %49 = vector.load %arg3[%c5, %c0_24] : memref<16x128xf32, #tpu.memory_space<vmem>>, vector<1x128xf32>
    %50 = vector.broadcast %49 : vector<1x128xf32> to vector<16x128xf32>
    %51 = arith.addf %48, %50 : vector<16x128xf32>
    %c640 = arith.constant 640 : index
    %c0_25 = arith.constant 0 : index
    %52 = vector.load %arg2[%c640, %c0_25] : memref<1408x128xf32, #tpu.memory_space<vmem>>, vector<128x128xf32>
    %cst_26 = arith.constant dense<0.000000e+00> : vector<16x128xf32>
    %53 = tpu.matmul %26, %52, %cst_26 {dimension_numbers = #tpu.dot_dimension_numbers<[1], [0], [0], [1], [0, 0, 1, 1], [], []>} : vector<16x128xf32>, vector<128x128xf32>, vector<16x128xf32> -> vector<16x128xf32>
    %c7 = arith.constant 7 : index
    %c0_27 = arith.constant 0 : index
    %54 = vector.load %arg3[%c7, %c0_27] : memref<16x128xf32, #tpu.memory_space<vmem>>, vector<1x128xf32>
    %55 = vector.broadcast %54 : vector<1x128xf32> to vector<16x128xf32>
    %56 = arith.addf %53, %55 : vector<16x128xf32>
    %c16 = arith.constant 16 : index
    %c0_28 = arith.constant 0 : index
    %57 = vector.load %arg1[%c16, %c0_28] : memref<18x128xf32, #tpu.memory_space<vmem>>, vector<1x8xf32>
    %58 = vector.extract_strided_slice %31 {offsets = [0, 0], sizes = [8, 128], strides = [1, 1]} : vector<16x128xf32> to vector<8x128xf32>
    %59 = vector.extract_strided_slice %36 {offsets = [0, 0], sizes = [8, 128], strides = [1, 1]} : vector<16x128xf32> to vector<8x128xf32>
    %60 = vector.extract_strided_slice %41 {offsets = [0, 0], sizes = [8, 128], strides = [1, 1]} : vector<16x128xf32> to vector<8x128xf32>
    %cst_29 = arith.constant dense<0.000000e+00> : vector<8x8xf32>
    %61 = tpu.matmul %58, %59, %cst_29 {dimension_numbers = #tpu.dot_dimension_numbers<[1], [1], [0], [0], [0, 0, 1, 0], [], []>} : vector<8x128xf32>, vector<8x128xf32>, vector<8x8xf32> -> vector<8x8xf32>
    %62 = vector.broadcast %57 : vector<1x8xf32> to vector<8x8xf32>
    %63 = arith.addf %61, %62 : vector<8x8xf32>
    %cst_30 = arith.constant dense<0xFF800000> : vector<8xf32>
    %64 = vector.multi_reduction <maximumf>, %63, %cst_30 [1] : vector<8x8xf32> to vector<8xf32>
    %65 = vector.shape_cast %64 : vector<8xf32> to vector<8x1xf32>
    %66 = vector.broadcast %65 : vector<8x1xf32> to vector<8x8xf32>
    %67 = arith.subf %63, %66 : vector<8x8xf32>
    %68 = math.exp %67 : vector<8x8xf32>
    %cst_31 = arith.constant dense<0.000000e+00> : vector<8xf32>
    %69 = vector.multi_reduction <add>, %68, %cst_31 [1] : vector<8x8xf32> to vector<8xf32>
    %70 = vector.shape_cast %69 : vector<8xf32> to vector<8x1xf32>
    %71 = tpu.reciprocal %70 {approx = true} : vector<8x1xf32> -> vector<8x1xf32>
    %72 = vector.broadcast %71 : vector<8x1xf32> to vector<8x8xf32>
    %73 = arith.mulf %68, %72 : vector<8x8xf32>
    %cst_32 = arith.constant dense<0.000000e+00> : vector<8x128xf32>
    %74 = tpu.matmul %73, %60, %cst_32 {dimension_numbers = #tpu.dot_dimension_numbers<[1], [0], [0], [1], [0, 0, 1, 1], [], []>} : vector<8x8xf32>, vector<8x128xf32>, vector<8x128xf32> -> vector<8x128xf32>
    %75 = vector.extract_strided_slice %46 {offsets = [0, 0], sizes = [8, 128], strides = [1, 1]} : vector<16x128xf32> to vector<8x128xf32>
    %76 = vector.extract_strided_slice %51 {offsets = [0, 0], sizes = [8, 128], strides = [1, 1]} : vector<16x128xf32> to vector<8x128xf32>
    %77 = vector.extract_strided_slice %56 {offsets = [0, 0], sizes = [8, 128], strides = [1, 1]} : vector<16x128xf32> to vector<8x128xf32>
    %cst_33 = arith.constant dense<0.000000e+00> : vector<8x8xf32>
    %78 = tpu.matmul %75, %76, %cst_33 {dimension_numbers = #tpu.dot_dimension_numbers<[1], [1], [0], [0], [0, 0, 1, 0], [], []>} : vector<8x128xf32>, vector<8x128xf32>, vector<8x8xf32> -> vector<8x8xf32>
    %79 = vector.broadcast %57 : vector<1x8xf32> to vector<8x8xf32>
    %80 = arith.addf %78, %79 : vector<8x8xf32>
    %cst_34 = arith.constant dense<0xFF800000> : vector<8xf32>
    %81 = vector.multi_reduction <maximumf>, %80, %cst_34 [1] : vector<8x8xf32> to vector<8xf32>
    %82 = vector.shape_cast %81 : vector<8xf32> to vector<8x1xf32>
    %83 = vector.broadcast %82 : vector<8x1xf32> to vector<8x8xf32>
    %84 = arith.subf %80, %83 : vector<8x8xf32>
    %85 = math.exp %84 : vector<8x8xf32>
    %cst_35 = arith.constant dense<0.000000e+00> : vector<8xf32>
    %86 = vector.multi_reduction <add>, %85, %cst_35 [1] : vector<8x8xf32> to vector<8xf32>
    %87 = vector.shape_cast %86 : vector<8xf32> to vector<8x1xf32>
    %88 = tpu.reciprocal %87 {approx = true} : vector<8x1xf32> -> vector<8x1xf32>
    %89 = vector.broadcast %88 : vector<8x1xf32> to vector<8x8xf32>
    %90 = arith.mulf %85, %89 : vector<8x8xf32>
    %cst_36 = arith.constant dense<0.000000e+00> : vector<8x128xf32>
    %91 = tpu.matmul %90, %77, %cst_36 {dimension_numbers = #tpu.dot_dimension_numbers<[1], [0], [0], [1], [0, 0, 1, 1], [], []>} : vector<8x8xf32>, vector<8x128xf32>, vector<8x128xf32> -> vector<8x128xf32>
    %92 = tpu.concatenate %74, %91 in 1 : vector<8x128xf32>, vector<8x128xf32> -> vector<8x256xf32>
    %c17 = arith.constant 17 : index
    %c0_37 = arith.constant 0 : index
    %93 = vector.load %arg1[%c17, %c0_37] : memref<18x128xf32, #tpu.memory_space<vmem>>, vector<1x8xf32>
    %94 = vector.extract_strided_slice %31 {offsets = [8, 0], sizes = [8, 128], strides = [1, 1]} : vector<16x128xf32> to vector<8x128xf32>
    %95 = vector.extract_strided_slice %36 {offsets = [8, 0], sizes = [8, 128], strides = [1, 1]} : vector<16x128xf32> to vector<8x128xf32>
    %96 = vector.extract_strided_slice %41 {offsets = [8, 0], sizes = [8, 128], strides = [1, 1]} : vector<16x128xf32> to vector<8x128xf32>
    %cst_38 = arith.constant dense<0.000000e+00> : vector<8x8xf32>
    %97 = tpu.matmul %94, %95, %cst_38 {dimension_numbers = #tpu.dot_dimension_numbers<[1], [1], [0], [0], [0, 0, 1, 0], [], []>} : vector<8x128xf32>, vector<8x128xf32>, vector<8x8xf32> -> vector<8x8xf32>
    %98 = vector.broadcast %93 : vector<1x8xf32> to vector<8x8xf32>
    %99 = arith.addf %97, %98 : vector<8x8xf32>
    %cst_39 = arith.constant dense<0xFF800000> : vector<8xf32>
    %100 = vector.multi_reduction <maximumf>, %99, %cst_39 [1] : vector<8x8xf32> to vector<8xf32>
    %101 = vector.shape_cast %100 : vector<8xf32> to vector<8x1xf32>
    %102 = vector.broadcast %101 : vector<8x1xf32> to vector<8x8xf32>
    %103 = arith.subf %99, %102 : vector<8x8xf32>
    %104 = math.exp %103 : vector<8x8xf32>
    %cst_40 = arith.constant dense<0.000000e+00> : vector<8xf32>
    %105 = vector.multi_reduction <add>, %104, %cst_40 [1] : vector<8x8xf32> to vector<8xf32>
    %106 = vector.shape_cast %105 : vector<8xf32> to vector<8x1xf32>
    %107 = tpu.reciprocal %106 {approx = true} : vector<8x1xf32> -> vector<8x1xf32>
    %108 = vector.broadcast %107 : vector<8x1xf32> to vector<8x8xf32>
    %109 = arith.mulf %104, %108 : vector<8x8xf32>
    %cst_41 = arith.constant dense<0.000000e+00> : vector<8x128xf32>
    %110 = tpu.matmul %109, %96, %cst_41 {dimension_numbers = #tpu.dot_dimension_numbers<[1], [0], [0], [1], [0, 0, 1, 1], [], []>} : vector<8x8xf32>, vector<8x128xf32>, vector<8x128xf32> -> vector<8x128xf32>
    %111 = vector.extract_strided_slice %46 {offsets = [8, 0], sizes = [8, 128], strides = [1, 1]} : vector<16x128xf32> to vector<8x128xf32>
    %112 = vector.extract_strided_slice %51 {offsets = [8, 0], sizes = [8, 128], strides = [1, 1]} : vector<16x128xf32> to vector<8x128xf32>
    %113 = vector.extract_strided_slice %56 {offsets = [8, 0], sizes = [8, 128], strides = [1, 1]} : vector<16x128xf32> to vector<8x128xf32>
    %cst_42 = arith.constant dense<0.000000e+00> : vector<8x8xf32>
    %114 = tpu.matmul %111, %112, %cst_42 {dimension_numbers = #tpu.dot_dimension_numbers<[1], [1], [0], [0], [0, 0, 1, 0], [], []>} : vector<8x128xf32>, vector<8x128xf32>, vector<8x8xf32> -> vector<8x8xf32>
    %115 = vector.broadcast %93 : vector<1x8xf32> to vector<8x8xf32>
    %116 = arith.addf %114, %115 : vector<8x8xf32>
    %cst_43 = arith.constant dense<0xFF800000> : vector<8xf32>
    %117 = vector.multi_reduction <maximumf>, %116, %cst_43 [1] : vector<8x8xf32> to vector<8xf32>
    %118 = vector.shape_cast %117 : vector<8xf32> to vector<8x1xf32>
    %119 = vector.broadcast %118 : vector<8x1xf32> to vector<8x8xf32>
    %120 = arith.subf %116, %119 : vector<8x8xf32>
    %121 = math.exp %120 : vector<8x8xf32>
    %cst_44 = arith.constant dense<0.000000e+00> : vector<8xf32>
    %122 = vector.multi_reduction <add>, %121, %cst_44 [1] : vector<8x8xf32> to vector<8xf32>
    %123 = vector.shape_cast %122 : vector<8xf32> to vector<8x1xf32>
    %124 = tpu.reciprocal %123 {approx = true} : vector<8x1xf32> -> vector<8x1xf32>
    %125 = vector.broadcast %124 : vector<8x1xf32> to vector<8x8xf32>
    %126 = arith.mulf %121, %125 : vector<8x8xf32>
    %cst_45 = arith.constant dense<0.000000e+00> : vector<8x128xf32>
    %127 = tpu.matmul %126, %113, %cst_45 {dimension_numbers = #tpu.dot_dimension_numbers<[1], [0], [0], [1], [0, 0, 1, 1], [], []>} : vector<8x8xf32>, vector<8x128xf32>, vector<8x128xf32> -> vector<8x128xf32>
    %128 = tpu.concatenate %110, %127 in 1 : vector<8x128xf32>, vector<8x128xf32> -> vector<8x256xf32>
    %129 = tpu.concatenate %92, %128 in 0 : vector<8x256xf32>, vector<8x256xf32> -> vector<16x256xf32>
    %c768 = arith.constant 768 : index
    %c0_46 = arith.constant 0 : index
    %130 = vector.load %arg2[%c768, %c0_46] : memref<1408x128xf32, #tpu.memory_space<vmem>>, vector<256x128xf32>
    %cst_47 = arith.constant dense<0.000000e+00> : vector<16x128xf32>
    %131 = tpu.matmul %129, %130, %cst_47 {dimension_numbers = #tpu.dot_dimension_numbers<[1], [0], [0], [1], [0, 0, 1, 1], [], []>} : vector<16x256xf32>, vector<256x128xf32>, vector<16x128xf32> -> vector<16x128xf32>
    %c8 = arith.constant 8 : index
    %c0_48 = arith.constant 0 : index
    %132 = vector.load %arg3[%c8, %c0_48] : memref<16x128xf32, #tpu.memory_space<vmem>>, vector<1x128xf32>
    %133 = vector.broadcast %132 : vector<1x128xf32> to vector<16x128xf32>
    %134 = arith.addf %131, %133 : vector<16x128xf32>
    %135 = arith.addf %134, %26 : vector<16x128xf32>
    %cst_49 = arith.constant dense<0.000000e+00> : vector<16xf32>
    %136 = vector.multi_reduction <add>, %135, %cst_49 [1] : vector<16x128xf32> to vector<16xf32>
    %137 = vector.shape_cast %136 : vector<16xf32> to vector<16x1xf32>
    %cst_50 = arith.constant 3.125000e-02 : f32
    %138 = vector.broadcast %cst_50 : f32 to vector<16x1xf32>
    %139 = arith.mulf %137, %138 : vector<16x1xf32>
    %140 = arith.mulf %135, %135 : vector<16x128xf32>
    %cst_51 = arith.constant dense<0.000000e+00> : vector<16xf32>
    %141 = vector.multi_reduction <add>, %140, %cst_51 [1] : vector<16x128xf32> to vector<16xf32>
    %142 = vector.shape_cast %141 : vector<16xf32> to vector<16x1xf32>
    %cst_52 = arith.constant 3.125000e-02 : f32
    %143 = vector.broadcast %cst_52 : f32 to vector<16x1xf32>
    %144 = arith.mulf %142, %143 : vector<16x1xf32>
    %145 = arith.mulf %139, %139 : vector<16x1xf32>
    %146 = arith.subf %144, %145 : vector<16x1xf32>
    %cst_53 = arith.constant 0.000000e+00 : f32
    %147 = vector.broadcast %cst_53 : f32 to vector<16x1xf32>
    %148 = arith.maximumf %146, %147 : vector<16x1xf32>
    %149 = vector.broadcast %139 : vector<16x1xf32> to vector<16x128xf32>
    %150 = arith.subf %135, %149 : vector<16x128xf32>
    %cst_54 = arith.constant 9.99999996E-13 : f32
    %151 = vector.broadcast %cst_54 : f32 to vector<16x1xf32>
    %152 = arith.addf %148, %151 : vector<16x1xf32>
    %153 = math.rsqrt %152 : vector<16x1xf32>
    %154 = vector.broadcast %153 : vector<16x1xf32> to vector<16x128xf32>
    %155 = arith.mulf %150, %154 : vector<16x128xf32>
    %c9 = arith.constant 9 : index
    %c0_55 = arith.constant 0 : index
    %156 = vector.load %arg3[%c9, %c0_55] : memref<16x128xf32, #tpu.memory_space<vmem>>, vector<1x128xf32>
    %157 = vector.broadcast %156 : vector<1x128xf32> to vector<16x128xf32>
    %158 = arith.mulf %155, %157 : vector<16x128xf32>
    %c10 = arith.constant 10 : index
    %c0_56 = arith.constant 0 : index
    %159 = vector.load %arg3[%c10, %c0_56] : memref<16x128xf32, #tpu.memory_space<vmem>>, vector<1x128xf32>
    %160 = vector.broadcast %159 : vector<1x128xf32> to vector<16x128xf32>
    %161 = arith.addf %158, %160 : vector<16x128xf32>
    %c1024 = arith.constant 1024 : index
    %c0_57 = arith.constant 0 : index
    %162 = vector.load %arg2[%c1024, %c0_57] : memref<1408x128xf32, #tpu.memory_space<vmem>>, vector<128x128xf32>
    %cst_58 = arith.constant dense<0.000000e+00> : vector<16x128xf32>
    %163 = tpu.matmul %161, %162, %cst_58 {dimension_numbers = #tpu.dot_dimension_numbers<[1], [0], [0], [1], [0, 0, 1, 1], [], []>} : vector<16x128xf32>, vector<128x128xf32>, vector<16x128xf32> -> vector<16x128xf32>
    %c11 = arith.constant 11 : index
    %c0_59 = arith.constant 0 : index
    %164 = vector.load %arg3[%c11, %c0_59] : memref<16x128xf32, #tpu.memory_space<vmem>>, vector<1x128xf32>
    %165 = vector.broadcast %164 : vector<1x128xf32> to vector<16x128xf32>
    %166 = arith.addf %163, %165 : vector<16x128xf32>
    %167 = arith.mulf %166, %166 : vector<16x128xf32>
    %168 = arith.mulf %166, %167 : vector<16x128xf32>
    %cst_60 = arith.constant 4.471500e-02 : f32
    %169 = vector.broadcast %cst_60 : f32 to vector<16x128xf32>
    %170 = arith.mulf %169, %168 : vector<16x128xf32>
    %171 = arith.addf %166, %170 : vector<16x128xf32>
    %cst_61 = arith.constant 0.797884583 : f32
    %172 = vector.broadcast %cst_61 : f32 to vector<16x128xf32>
    %173 = arith.mulf %172, %171 : vector<16x128xf32>
    %174 = math.tanh %173 : vector<16x128xf32>
    %cst_62 = arith.constant 1.000000e+00 : f32
    %175 = vector.broadcast %cst_62 : f32 to vector<16x128xf32>
    %176 = arith.addf %175, %174 : vector<16x128xf32>
    %cst_63 = arith.constant 5.000000e-01 : f32
    %177 = vector.broadcast %cst_63 : f32 to vector<16x128xf32>
    %178 = arith.mulf %177, %176 : vector<16x128xf32>
    %179 = arith.mulf %166, %178 : vector<16x128xf32>
    %c1152 = arith.constant 1152 : index
    %c0_64 = arith.constant 0 : index
    %180 = vector.load %arg2[%c1152, %c0_64] : memref<1408x128xf32, #tpu.memory_space<vmem>>, vector<128x128xf32>
    %cst_65 = arith.constant dense<0.000000e+00> : vector<16x128xf32>
    %181 = tpu.matmul %179, %180, %cst_65 {dimension_numbers = #tpu.dot_dimension_numbers<[1], [0], [0], [1], [0, 0, 1, 1], [], []>} : vector<16x128xf32>, vector<128x128xf32>, vector<16x128xf32> -> vector<16x128xf32>
    %c12 = arith.constant 12 : index
    %c0_66 = arith.constant 0 : index
    %182 = vector.load %arg3[%c12, %c0_66] : memref<16x128xf32, #tpu.memory_space<vmem>>, vector<1x128xf32>
    %183 = vector.broadcast %182 : vector<1x128xf32> to vector<16x128xf32>
    %184 = arith.addf %181, %183 : vector<16x128xf32>
    %185 = arith.addf %184, %161 : vector<16x128xf32>
    %cst_67 = arith.constant dense<0.000000e+00> : vector<16xf32>
    %186 = vector.multi_reduction <add>, %185, %cst_67 [1] : vector<16x128xf32> to vector<16xf32>
    %187 = vector.shape_cast %186 : vector<16xf32> to vector<16x1xf32>
    %cst_68 = arith.constant 3.125000e-02 : f32
    %188 = vector.broadcast %cst_68 : f32 to vector<16x1xf32>
    %189 = arith.mulf %187, %188 : vector<16x1xf32>
    %190 = arith.mulf %185, %185 : vector<16x128xf32>
    %cst_69 = arith.constant dense<0.000000e+00> : vector<16xf32>
    %191 = vector.multi_reduction <add>, %190, %cst_69 [1] : vector<16x128xf32> to vector<16xf32>
    %192 = vector.shape_cast %191 : vector<16xf32> to vector<16x1xf32>
    %cst_70 = arith.constant 3.125000e-02 : f32
    %193 = vector.broadcast %cst_70 : f32 to vector<16x1xf32>
    %194 = arith.mulf %192, %193 : vector<16x1xf32>
    %195 = arith.mulf %189, %189 : vector<16x1xf32>
    %196 = arith.subf %194, %195 : vector<16x1xf32>
    %cst_71 = arith.constant 0.000000e+00 : f32
    %197 = vector.broadcast %cst_71 : f32 to vector<16x1xf32>
    %198 = arith.maximumf %196, %197 : vector<16x1xf32>
    %199 = vector.broadcast %189 : vector<16x1xf32> to vector<16x128xf32>
    %200 = arith.subf %185, %199 : vector<16x128xf32>
    %cst_72 = arith.constant 9.99999996E-13 : f32
    %201 = vector.broadcast %cst_72 : f32 to vector<16x1xf32>
    %202 = arith.addf %198, %201 : vector<16x1xf32>
    %203 = math.rsqrt %202 : vector<16x1xf32>
    %204 = vector.broadcast %203 : vector<16x1xf32> to vector<16x128xf32>
    %205 = arith.mulf %200, %204 : vector<16x128xf32>
    %c13 = arith.constant 13 : index
    %c0_73 = arith.constant 0 : index
    %206 = vector.load %arg3[%c13, %c0_73] : memref<16x128xf32, #tpu.memory_space<vmem>>, vector<1x128xf32>
    %207 = vector.broadcast %206 : vector<1x128xf32> to vector<16x128xf32>
    %208 = arith.mulf %205, %207 : vector<16x128xf32>
    %c14 = arith.constant 14 : index
    %c0_74 = arith.constant 0 : index
    %209 = vector.load %arg3[%c14, %c0_74] : memref<16x128xf32, #tpu.memory_space<vmem>>, vector<1x128xf32>
    %210 = vector.broadcast %209 : vector<1x128xf32> to vector<16x128xf32>
    %211 = arith.addf %208, %210 : vector<16x128xf32>
    %c0_75 = arith.constant 0 : index
    %c0_76 = arith.constant 0 : index
    %212 = vector.load %arg4[%c0_75, %c0_76] : memref<16x128xf32, #tpu.memory_space<vmem>>, vector<16x128xf32>
    tpu.vector_store %arg4[%c0_75, %c0_76], %211 {strides = array<i32>} : memref<16x128xf32, #tpu.memory_space<vmem>>, vector<16x128xf32>,
    %c1280 = arith.constant 1280 : index
    %c0_77 = arith.constant 0 : index
    %213 = vector.load %arg2[%c1280, %c0_77] : memref<1408x128xf32, #tpu.memory_space<vmem>>, vector<128x128xf32>
    %cst_78 = arith.constant dense<0.000000e+00> : vector<16x128xf32>
    %214 = tpu.matmul %211, %213, %cst_78 {dimension_numbers = #tpu.dot_dimension_numbers<[1], [0], [0], [1], [0, 0, 1, 1], [], []>} : vector<16x128xf32>, vector<128x128xf32>, vector<16x128xf32> -> vector<16x128xf32>
    %c15 = arith.constant 15 : index
    %c0_79 = arith.constant 0 : index
    %215 = vector.load %arg3[%c15, %c0_79] : memref<16x128xf32, #tpu.memory_space<vmem>>, vector<1x128xf32>
    %216 = vector.broadcast %215 : vector<1x128xf32> to vector<16x128xf32>
    %217 = arith.addf %214, %216 : vector<16x128xf32>
    %218 = arith.negf %217 : vector<16x128xf32>
    %219 = math.exp %218 : vector<16x128xf32>
    %cst_80 = arith.constant 1.000000e+00 : f32
    %220 = vector.broadcast %cst_80 : f32 to vector<16x128xf32>
    %221 = arith.addf %220, %219 : vector<16x128xf32>
    %222 = arith.divf %220, %221 : vector<16x128xf32>
    %223 = arith.mulf %222, %222 : vector<16x128xf32>
    %c0_81 = arith.constant 0 : index
    %c0_82 = arith.constant 0 : index
    %224 = vector.load %arg5[%c0_81, %c0_82] : memref<16x128xf32, #tpu.memory_space<vmem>>, vector<16x128xf32>
    tpu.vector_store %arg5[%c0_81, %c0_82], %223 {strides = array<i32>} : memref<16x128xf32, #tpu.memory_space<vmem>>, vector<16x128xf32>,
    return
  }
  func.func @transform_0(%arg0: i32) -> (i32, i32) {
    %c0_i32 = arith.constant 0 : i32
    %c0_i32_0 = arith.constant 0 : i32
    %c0_i32_1 = arith.constant 0 : i32
    return %c0_i32, %c0_i32_0 : i32, i32
  }
  func.func @transform_1(%arg0: i32) -> (i32, i32) {
    %c0_i32 = arith.constant 0 : i32
    %c0_i32_0 = arith.constant 0 : i32
    %c0_i32_1 = arith.constant 0 : i32
    return %c0_i32, %c0_i32_0 : i32, i32
  }
  func.func @transform_2(%arg0: i32) -> (i32, i32) {
    %c0_i32 = arith.constant 0 : i32
    %c0_i32_0 = arith.constant 0 : i32
    %c0_i32_1 = arith.constant 0 : i32
    return %c0_i32, %c0_i32_0 : i32, i32
  }
  func.func @transform_3(%arg0: i32) -> (i32, i32) {
    %c0_i32 = arith.constant 0 : i32
    %c0_i32_0 = arith.constant 0 : i32
    %c0_i32_1 = arith.constant 0 : i32
    return %c0_i32, %c0_i32_0 : i32, i32
  }
  func.func @transform_4(%arg0: i32) -> (i32, i32) {
    %c0_i32 = arith.constant 0 : i32
    %c0_i32_0 = arith.constant 0 : i32
    %c0_i32_1 = arith.constant 0 : i32
    return %c0_i32, %c0_i32_0 : i32, i32
  }
}

</mosaic_0001>

<bundles_post_ra>
// kernel: model4s_forward.1
= control target key start
LH: loop header
LB: loop body
LE: loop exit
PB: predicated region body
PF: predicated region fallthrough
CT: control target
= control target key end

     0   :  { %10 = vsyncpa [#allocation3], 0  ;;  %s1050_s18 = smov [#allocation2]   ;;  %s1051_s20 = smov 128   ;;  %s1253_s0 = inlined_call_operand.vmem [shape: f32[18,128], index: 0, kind: input, shape index: {}]   ;;  %s1254_s1 = inlined_call_operand.hbm [shape: f32[1408,128], index: 1, kind: input, shape index: {}]   ;;  %s1255_s2 = inlined_call_operand.vmem [shape: f32[16,128], index: 2, kind: input, shape index: {}]   ;;  %s1256_s3 = inlined_call_operand.vmem [shape: f32[16,128], index: 3, kind: output, shape index: {0}]   ;;  %s1257_s4 = inlined_call_operand.vmem [shape: f32[16,128], index: 4, kind: output, shape index: {1}]  }
   0x1   :  { %s17_s17 = sshll.u32 %s1254_s1, 4  ;;  %s19_s19 = sshll.u32 %s1050_s18, 4  ;;  %s18_s17 = int_to_ptr.hbm [resolvable:$true] %s17_s17  ;;  %s20_s19 = int_to_ptr.vmem [resolvable:$true] %s19_s19 }
   0x2   :  { %s1052_s21 = smov 8  }
   0x3   :  { %25 = dma.hbm_to_vmem [thread:$0]  %s18_s17, 22528, %s20_s19, [#allocation3], %s1051_s20, %s1051_s20, %s1052_s21  }
   0x4   :  { %1048 = dma.done.wait [#allocation3], 22528  }
   0x5   :  { %1049 = vsyncadd [#allocation3], 4294944768  ;;  %v1084_v0 = vld [vmem:[%s1253_s0 + $0x8] sm:$0xff]  ;;  %v1089_v1 = vld [vmem:[%s1253_s0] sm:$0xff]  ;;  %vm356_vm6 = vcmask 64512  }
   0x6   :  { %v103_v2 = vld [vmem:[#allocation2 + $0x78] sm:$0xff]  ;;  %36 = vadd.xlane.f32.xlu1 %v1084_v0  ;;  %34 = vadd.xlane.f32.xlu0 %v1089_v1  ;;  %v102_v4 = vld [vmem:[#allocation2 + $0x70] sm:$0xff]  ;;  %v101_v6 = vld [vmem:[#allocation2 + $0x68] sm:$0xff]  ;;  %v41_v8 = vmul.f32 %v1084_v0, %v1084_v0  ;;  %v40_v9 = vmul.f32 %v1089_v1, %v1089_v1 }
   0x7   :  { %v144_v3 = vld [vmem:[#allocation2 + $0x178] sm:$0xff]  ;;  %v143_v5 = vld [vmem:[#allocation2 + $0x170] sm:$0xff]  ;;  %106 = vmatpush.msra.mxu0 %v103_v2  ;;  %v142_v7 = vld [vmem:[#allocation2 + $0x168] sm:$0xff] }
   0x8   :  { %147 = vmatpush.msra.mxu1 %v144_v3  ;;  %v100_v10 = vld [vmem:[#allocation2 + $0x60] sm:$0xff]  ;;  %v99_v12 = vld [vmem:[#allocation2 + $0x58] sm:$0xff]  ;;  %v98_v14 = vld [vmem:[#allocation2 + $0x50] sm:$0xff] }
   0x9   :  { %107 = vmatpush.msra.mxu0 %v102_v4  ;;  %v141_v11 = vld [vmem:[#allocation2 + $0x160] sm:$0xff]  ;;  %v140_v13 = vld [vmem:[#allocation2 + $0x158] sm:$0xff]  ;;  %v139_v15 = vld [vmem:[#allocation2 + $0x150] sm:$0xff] }
   0xa   :  { %148 = vmatpush.msra.mxu1 %v143_v5  ;;  %v97_v16 = vld [vmem:[#allocation2 + $0x48] sm:$0xff]  ;;  %v96_v18 = vld [vmem:[#allocation2 + $0x40] sm:$0xff]  ;;  %v185_v20 = vld [vmem:[#allocation2 + $0x278] sm:$0xff] }
   0xb   :  { %108 = vmatpush.msra.mxu0 %v101_v6  ;;  %v138_v17 = vld [vmem:[#allocation2 + $0x148] sm:$0xff]  ;;  %v137_v19 = vld [vmem:[#allocation2 + $0x140] sm:$0xff]  ;;  %v226_v21 = vld [vmem:[#allocation2 + $0xf8] sm:$0xff]  ;;  %188 = vmatpush.msra.mxu2 %v185_v20 }
   0xc   :  { %149 = vmatpush.msra.mxu1 %v142_v7  ;;  %229 = vmatpush.msra.mxu3 %v226_v21  ;;  %v95_v22 = vld [vmem:[#allocation2 + $0x38] sm:$0xff]  ;;  %v184_v24 = vld [vmem:[#allocation2 + $0x270] sm:$0xff]  ;;  %v183_v28 = vld [vmem:[#allocation2 + $0x268] sm:$0xff] }
   0xd   :  { %109 = vmatpush.msra.mxu0 %v100_v10  ;;  %v136_v23 = vld [vmem:[#allocation2 + $0x138] sm:$0xff]  ;;  %v225_v25 = vld [vmem:[#allocation2 + $0xf0] sm:$0xff]  ;;  %189 = vmatpush.msra.mxu2 %v184_v24  ;;  %v224_v29 = vld [vmem:[#allocation2 + $0xe8] sm:$0xff] }
   0xe   :  { %44 = vadd.xlane.f32.xlu1 %v41_v8  ;;  %42 = vadd.xlane.f32.xlu0 %v40_v9  ;;  %v94_v26 = vld [vmem:[#allocation2 + $0x30] sm:$0xff]  ;;  %v93_v30 = vld [vmem:[#allocation2 + $0x28] sm:$0xff]  ;;  %v182_v32 = vld [vmem:[#allocation2 + $0x260] sm:$0xff] }
   0xf   :  { %150 = vmatpush.msra.mxu1 %v141_v11  ;;  %110 = vmatpush.msra.mxu0 %v99_v12  ;;  %v135_v27 = vld [vmem:[#allocation2 + $0x130] sm:$0xff]  ;;  %v134_v31 = vld [vmem:[#allocation2 + $0x128] sm:$0xff]  ;;  %v223_v33 = vld [vmem:[#allocation2 + $0xe0] sm:$0xff] }
  0x10   :  { %230 = vmatpush.msra.mxu3 %v225_v25  ;;  %190 = vmatpush.msra.mxu2 %v183_v28  ;;  %v92_v34 = vld [vmem:[#allocation2 + $0x20] sm:$0xff]  ;;  %v181_v36 = vld [vmem:[#allocation2 + $0x258] sm:$0xff]  ;;  %v180_v40 = vld [vmem:[#allocation2 + $0x250] sm:$0xff] }
  0x11   :  { %151 = vmatpush.msra.mxu1 %v140_v13  ;;  %111 = vmatpush.msra.mxu0 %v98_v14  ;;  %v133_v35 = vld [vmem:[#allocation2 + $0x120] sm:$0xff]  ;;  %v222_v37 = vld [vmem:[#allocation2 + $0xd8] sm:$0xff]  ;;  %v221_v41 = vld [vmem:[#allocation2 + $0xd0] sm:$0xff] }
  0x12   :  { %231 = vmatpush.msra.mxu3 %v224_v29  ;;  %191 = vmatpush.msra.mxu2 %v182_v32  ;;  %v91_v38 = vld [vmem:[#allocation2 + $0x18] sm:$0xff]  ;;  %v90_v42 = vld [vmem:[#allocation2 + $0x10] sm:$0xff]  ;;  %v179_v44 = vld [vmem:[#allocation2 + $0x248] sm:$0xff] }
  0x13   :  { %152 = vmatpush.msra.mxu1 %v139_v15  ;;  %112 = vmatpush.msra.mxu0 %v97_v16  ;;  %v132_v39 = vld [vmem:[#allocation2 + $0x118] sm:$0xff]  ;;  %v131_v43 = vld [vmem:[#allocation2 + $0x110] sm:$0xff]  ;;  %v220_v45 = vld [vmem:[#allocation2 + $0xc8] sm:$0xff] }
  0x14   :  { %232 = vmatpush.msra.mxu3 %v223_v33  ;;  %192 = vmatpush.msra.mxu2 %v181_v36  ;;  %v89_v46 = vld [vmem:[#allocation2 + $0x8] sm:$0xff]  ;;  %v178_v48 = vld [vmem:[#allocation2 + $0x240] sm:$0xff]  ;;  %v177_v52 = vld [vmem:[#allocation2 + $0x238] sm:$0xff] }
  0x15   :  { %153 = vmatpush.msra.mxu1 %v138_v17  ;;  %113 = vmatpush.msra.mxu0 %v96_v18  ;;  %v130_v47 = vld [vmem:[#allocation2 + $0x108] sm:$0xff]  ;;  %v219_v49 = vld [vmem:[#allocation2 + $0xc0] sm:$0xff]  ;;  %v218_v53 = vld [vmem:[#allocation2 + $0xb8] sm:$0xff] }
  0x16   :  { %233 = vmatpush.msra.mxu3 %v222_v37  ;;  %193 = vmatpush.msra.mxu2 %v180_v40  ;;  %v88_v50 = vld [vmem:[#allocation2] sm:$0xff]  ;;  %v267_v54 = vld [vmem:[#allocation2 + $0x1f8] sm:$0xff]  ;;  %v176_v56 = vld [vmem:[#allocation2 + $0x230] sm:$0xff] }
  0x17   :  { %154 = vmatpush.msra.mxu1 %v137_v19  ;;  %114 = vmatpush.msra.mxu0 %v95_v22  ;;  %v129_v51 = vld [vmem:[#allocation2 + $0x100] sm:$0xff]  ;;  %v308_v55 = vld [vmem:[#allocation2 + $0x2f8] sm:$0xff]  ;;  %v217_v57 = vld [vmem:[#allocation2 + $0xb0] sm:$0xff] }
  0x18   :  { %234 = vmatpush.msra.mxu3 %v221_v41  ;;  %194 = vmatpush.msra.mxu2 %v179_v44  ;;  %v266_v58 = vld [vmem:[#allocation2 + $0x1f0] sm:$0xff]  ;;  %v175_v60 = vld [vmem:[#allocation2 + $0x228] sm:$0xff]  ;;  %v174_v4 = vld [vmem:[#allocation2 + $0x220] sm:$0xff] }
  0x19   :  { %155 = vmatpush.msra.mxu1 %v136_v23  ;;  %115 = vmatpush.msra.mxu0 %v94_v26  ;;  %v307_v59 = vld [vmem:[#allocation2 + $0x2f0] sm:$0xff]  ;;  %v216_v61 = vld [vmem:[#allocation2 + $0xa8] sm:$0xff]  ;;  %v215_v5 = vld [vmem:[#allocation2 + $0xa0] sm:$0xff] }
  0x1a   :  { %235 = vmatpush.msra.mxu3 %v220_v45  ;;  %195 = vmatpush.msra.mxu2 %v178_v48  ;;  %v265_v62 = vld [vmem:[#allocation2 + $0x1e8] sm:$0xff]  ;;  %v264_v6 = vld [vmem:[#allocation2 + $0x1e0] sm:$0xff]  ;;  %v173_v8 = vld [vmem:[#allocation2 + $0x218] sm:$0xff] }
  0x1b   :  { %156 = vmatpush.msra.mxu1 %v135_v27  ;;  %116 = vmatpush.msra.mxu0 %v93_v30  ;;  %v306_v63 = vld [vmem:[#allocation2 + $0x2e8] sm:$0xff]  ;;  %v305_v7 = vld [vmem:[#allocation2 + $0x2e0] sm:$0xff]  ;;  %v214_v9 = vld [vmem:[#allocation2 + $0x98] sm:$0xff] }
  0x1c   :  { %236 = vmatpush.msra.mxu3 %v219_v49  ;;  %196 = vmatpush.msra.mxu2 %v177_v52  ;;  %v263_v10 = vld [vmem:[#allocation2 + $0x1d8] sm:$0xff]  ;;  %v172_v13 = vld [vmem:[#allocation2 + $0x210] sm:$0xff]  ;;  %v171_v18 = vld [vmem:[#allocation2 + $0x208] sm:$0xff] }
  0x1d   :  { %157 = vmatpush.msra.mxu1 %v134_v31  ;;  %117 = vmatpush.msra.mxu0 %v92_v34  ;;  %v304_v12 = vld [vmem:[#allocation2 + $0x2d8] sm:$0xff]  ;;  %v213_v14 = vld [vmem:[#allocation2 + $0x90] sm:$0xff]  ;;  %v212_v19 = vld [vmem:[#allocation2 + $0x88] sm:$0xff] }
  0x1e   :  { %237 = vmatpush.msra.mxu3 %v218_v53  ;;  %197 = vmatpush.msra.mxu2 %v176_v56  ;;  %v262_v15 = vld [vmem:[#allocation2 + $0x1d0] sm:$0xff]  ;;  %v261_v20 = vld [vmem:[#allocation2 + $0x1c8] sm:$0xff]  ;;  %v170_v25 = vld [vmem:[#allocation2 + $0x200] sm:$0xff] }
  0x1f   :  { %158 = vmatpush.msra.mxu1 %v133_v35  ;;  %118 = vmatpush.msra.mxu0 %v91_v38  ;;  %v303_v17 = vld [vmem:[#allocation2 + $0x2d0] sm:$0xff]  ;;  %v302_v22 = vld [vmem:[#allocation2 + $0x2c8] sm:$0xff]  ;;  %v211_v26 = vld [vmem:[#allocation2 + $0x80] sm:$0xff] }
  0x20   :  { %238 = vmatpush.msra.mxu3 %v217_v57  ;;  %198 = vmatpush.msra.mxu2 %v175_v60  ;;  %v260_v27 = vld [vmem:[#allocation2 + $0x1c0] sm:$0xff]  ;;  %v259_v34 = vld [vmem:[#allocation2 + $0x1b8] sm:$0xff]  ;;  %v258_v36 = vld [vmem:[#allocation2 + $0x1b0] sm:$0xff] }
  0x21   :  { %159 = vmatpush.msra.mxu1 %v132_v39  ;;  %119 = vmatpush.msra.mxu0 %v90_v42  ;;  %v301_v31 = vld [vmem:[#allocation2 + $0x2c0] sm:$0xff]  ;;  %v300_v35 = vld [vmem:[#allocation2 + $0x2b8] sm:$0xff]  ;;  %v299_v37 = vld [vmem:[#allocation2 + $0x2b0] sm:$0xff] }
  0x22   :  { %239 = vmatpush.msra.mxu3 %v216_v61  ;;  %199 = vmatpush.msra.mxu2 %v174_v4  ;;  %v257_v40 = vld [vmem:[#allocation2 + $0x1a8] sm:$0xff]  ;;  %v256_v44 = vld [vmem:[#allocation2 + $0x1a0] sm:$0xff]  ;;  %v254_v48 = vld [vmem:[#allocation2 + $0x190] sm:$0xff] }
  0x23   :  { %160 = vmatpush.msra.mxu1 %v131_v43  ;;  %120 = vmatpush.msra.mxu0 %v89_v46  ;;  %v298_v41 = vld [vmem:[#allocation2 + $0x2a8] sm:$0xff]  ;;  %v297_v45 = vld [vmem:[#allocation2 + $0x2a0] sm:$0xff]  ;;  %v255_v46 = vld [vmem:[#allocation2 + $0x198] sm:$0xff] }
  0x24   :  { %240 = vmatpush.msra.mxu3 %v215_v5  ;;  %200 = vmatpush.msra.mxu2 %v173_v8  ;;  %v295_v49 = vld [vmem:[#allocation2 + $0x290] sm:$0xff]  ;;  %v252_v53 = vld [vmem:[#allocation2 + $0x180] sm:$0xff] }
  0x25   :  { %161 = vmatpush.msra.mxu1 %v130_v47  ;;  %121 = vmatpush.msra.mxu0 %v88_v50  ;;  %v296_v47 = vld [vmem:[#allocation2 + $0x298] sm:$0xff]  ;;  %v253_v50 = vld [vmem:[#allocation2 + $0x188] sm:$0xff]  ;;  %v293_v56 = vld [vmem:[#allocation2 + $0x280] sm:$0xff] }
  0x26   :  { %241 = vmatpush.msra.mxu3 %v214_v9  ;;  %201 = vmatpush.msra.mxu2 %v172_v13  ;;  %v966_v5 = vld [vmem:[%s1255_s2] ss:$0 sm:$0xff] }
  0x27   :  { %162 = vmatpush.msra.mxu1 %v129_v51  ;;  %270 = vmatpush.msrb.mxu0 %v267_v54  ;;  %v294_v51 = vld [vmem:[#allocation2 + $0x288] sm:$0xff] }
  0x28   :  { %242 = vmatpush.msra.mxu3 %v213_v14  ;;  %202 = vmatpush.msra.mxu2 %v171_v18 }
  0x29   :  { %311 = vmatpush.msrb.mxu1 %v308_v55  ;;  %271 = vmatpush.msrb.mxu0 %v266_v58 }
  0x2a   :  { %243 = vmatpush.msra.mxu3 %v212_v19  ;;  %203 = vmatpush.msra.mxu2 %v170_v25  ;;  %v972_v25 = vld [vmem:[%s1255_s2 + $0x5] ss:$0 sm:$0xff] }
  0x2b   :  { %312 = vmatpush.msrb.mxu1 %v307_v59  ;;  %272 = vmatpush.msrb.mxu0 %v265_v62 }
  0x2c   :  { %244 = vmatpush.msra.mxu3 %v211_v26  ;;  %v1149_v26 = vld [vmem:[%s1255_s2 + $0x7] ss:$0 sm:$0xff] }
  0x2d   :  { %313 = vmatpush.msrb.mxu1 %v306_v63  ;;  %273 = vmatpush.msrb.mxu0 %v264_v6 }
  0x2f   :  { %314 = vmatpush.msrb.mxu1 %v305_v7  ;;  %274 = vmatpush.msrb.mxu0 %v263_v10  ;;  %v967_v7 = vld [vmem:[%s1255_s2 + $0x1] ss:$0 sm:$0xff] }
  0x31   :  { %315 = vmatpush.msrb.mxu1 %v304_v12  ;;  %275 = vmatpush.msrb.mxu0 %v262_v15 }
  0x33   :  { %316 = vmatpush.msrb.mxu1 %v303_v17  ;;  %276 = vmatpush.msrb.mxu0 %v261_v20  ;;  %v1140_v20 = vld [vmem:[%s1255_s2 + $0x6] ss:$0 sm:$0xff] }
  0x35   :  { %317 = vmatpush.msrb.mxu1 %v302_v22  ;;  %277 = vmatpush.msrb.mxu0 %v260_v27  ;;  %v971_v27 = vld [vmem:[%s1255_s2 + $0x3] ss:$0 sm:$0xff] }
  0x37   :  { %318 = vmatpush.msrb.mxu1 %v301_v31  ;;  %278 = vmatpush.msrb.mxu0 %v259_v34 }
  0x39   :  { %319 = vmatpush.msrb.mxu1 %v300_v35  ;;  %279 = vmatpush.msrb.mxu0 %v258_v36 }
  0x3b   :  { %320 = vmatpush.msrb.mxu1 %v299_v37  ;;  %280 = vmatpush.msrb.mxu0 %v257_v40 }
  0x3d   :  { %321 = vmatpush.msrb.mxu1 %v298_v41  ;;  %281 = vmatpush.msrb.mxu0 %v256_v44  ;;  %v974_v41 = vld [vmem:[%s1253_s0 + $0x10] ss:$0 sm:$0xff] }
  0x3f   :  { %322 = vmatpush.msrb.mxu1 %v297_v45  ;;  %282 = vmatpush.msrb.mxu0 %v255_v46 }
  0x41   :  { %323 = vmatpush.msrb.mxu1 %v296_v47  ;;  %283 = vmatpush.msrb.mxu0 %v254_v48  ;;  %v975_v48 = vld [vmem:[%s1253_s0 + $0x11] ss:$0 sm:$0xff] }
  0x43   :  { %324 = vmatpush.msrb.mxu1 %v295_v49  ;;  %284 = vmatpush.msrb.mxu0 %v253_v50 }
  0x45   :  { %325 = vmatpush.msrb.mxu1 %v294_v51  ;;  %285 = vmatpush.msrb.mxu0 %v252_v53 }
  0x47   :  { %326 = vmatpush.msrb.mxu1 %v293_v56 }
  0x79   :  { %v37_v2 = vpop.xlane.xlu1 %36  ;;  %v35_v3 = vpop.xlane.xlu0 %34 }
  0x7a   :  { %v1097_v11 = vmul.f32 0.03125, %v37_v2  ;;  %v1099_v16 = vmul.f32 0.03125, %v35_v3 }
  0x7c   :  { %v49_v21 = vmul.f32 %v1097_v11, %v1097_v11  ;;  %v48_v28 = vmul.f32 %v1099_v16, %v1099_v16  ;;  %v54_v4 = vsub.f32 %v1089_v1, %v1099_v16  ;;  %v55_v10 = vsub.f32 %v1084_v0, %v1097_v11  ;;  %v969_v0 = vld [vmem:[%s1255_s2 + $0x4] ss:$0 sm:$0xff]  ;;  %v968_v11 = vld [vmem:[%s1255_s2 + $0x2] ss:$0 sm:$0xff] }
  0x81   :  { %v45_v23 = vpop.xlane.xlu1 %44  ;;  %v43_v24 = vpop.xlane.xlu0 %42 }
  0x82   :  { %v47_v29 = vmul.f32 0.03125, %v45_v23  ;;  %v46_v30 = vmul.f32 0.03125, %v43_v24 }
  0x84   :  { %v51_v32 = vsub.f32 %v47_v29, %v49_v21  ;;  %v50_v33 = vsub.f32 %v46_v30, %v48_v28 }
  0x86   :  { %v53_v38 = vmax.f32 %v51_v32, 0.0  ;;  %v52_v39 = vmax.f32 %v50_v33, 0.0 }
  0x88   :  { %v57_v42 = vadd.f32 1e-12, %v53_v38  ;;  %v56_v43 = vadd.f32 1e-12, %v52_v39 }
  0x8a   :  { %984 = vrsqrt.f32 %v57_v42  ;;  %vm64_vm2 = vweird.f32 %v56_v43  ;;  %vm74_vm4 = vweird.f32 %v57_v42 }
  0x8b   :  { %986 = vrsqrt.f32 %v56_v43 }
  0x90   :  { %v985_v52 = vpop.eup %984 }
  0x91   :  { %v987_v54 = vpop.eup %986  ;;  %v69_v55 = vmul.f32 %v985_v52, %v57_v42  ;;  %vm75_vm1 = vweird.f32 %v985_v52 }
  0x92   :  { %v59_v57 = vmul.f32 %v987_v54, %v56_v43  ;;  %vm65_vm0 = vweird.f32 %v987_v54  ;;  %vm76_vm5 = vmor %vm74_vm4, %vm75_vm1 }
  0x93   :  { %v70_v58 = vmul.f32 %v985_v52, %v69_v55  ;;  %vm66_vm3 = vmor %vm64_vm2, %vm65_vm0 }
  0x94   :  { %v60_v59 = vmul.f32 %v987_v54, %v59_v57 }
  0x95   :  { %v71_v60 = vmul.f32 0.5, %v70_v58 }
  0x96   :  { %v61_v61 = vmul.f32 0.5, %v60_v59 }
  0x97   :  { %v72_v62 = vsub.f32 1.5, %v71_v60 }
  0x98   :  { %v62_v63 = vsub.f32 1.5, %v61_v61 }
  0x99   :  { %v73_v2 = vmul.f32 %v985_v52, %v72_v62 }
  0x9a   :  { %v63_v3 = vmul.f32 %v987_v54, %v62_v63 }
  0x9b   :  { %v77_v9 = vsel %vm76_vm5, %v985_v52, %v73_v2 }
  0x9c   :  { %v67_v6 = vsel %vm66_vm3, %v987_v54, %v63_v3  ;;  %v79_v13 = vmul.f32 %v77_v9, %v55_v10 }
  0x9d   :  { %v78_v8 = vmul.f32 %v67_v6, %v54_v4 }
  0x9e   :  { %v83_v14 = vmul.f32 %v966_v5, %v79_v13 }
  0x9f   :  { %v82_v12 = vmul.f32 %v966_v5, %v78_v8 }
  0xa0   :  { %v1121_v15 = vadd.f32 %v967_v7, %v83_v14 }
  0xa1   :  { %v1115_v1 = vadd.f32 %v967_v7, %v82_v12 }
  0xa3   :  { %122 = vmatmul.f32.vlgmr.msra.gmra.mxu0 %v1115_v1  ;;  %163 = vmatmul.f32.vlgmr.msra.gmra.mxu1 %v1115_v1 }
  0xa4   :  { %204 = vmatmul.f32.vlgmr.msra.gmra.mxu2 %v1115_v1  ;;  %245 = vmatmul.f32.vlgmr.msra.gmra.mxu3 %v1115_v1 }
  0xab   :  { %125 = vmatmul.f32.gmra.mxu0 %v1121_v15  ;;  %166 = vmatmul.f32.gmra.mxu1 %v1121_v15 }
  0xac   :  { %207 = vmatmul.f32.gmra.mxu2 %v1121_v15  ;;  %248 = vmatmul.f32.gmra.mxu3 %v1121_v15 }
  0xb3   :  { %286 = vmatmul.f32.vlgmr.msrb.gmra.mxu0 %v1115_v1  ;;  %327 = vmatmul.f32.vlgmr.msrb.gmra.mxu1 %v1115_v1 }
  0xbb   :  { %289 = vmatmul.f32.gmra.mxu0 %v1121_v15  ;;  %330 = vmatmul.f32.gmra.mxu1 %v1121_v15 }
 0x120   :  { %v123_v16 = vpop.f32.mrf.mxu0  ;;  %v164_v17 = vpop.f32.mrf.mxu1 }
 0x121   :  { %v165_v18 = vadd.f32 %v969_v0, %v164_v17  ;;  %v124_v19 = vadd.f32 %v968_v11, %v123_v16  ;;  %v570_v17 = vld [vmem:[#allocation2 + $0x378] sm:$0xff] }
 0x122   :  { %589 = vmatpush.msra.mxu0 %v570_v17  ;;  %v703_v17 = vld [vmem:[#allocation2 + $0x460] sm:$0xff] }
 0x123   :  { %351 = vmatpush.xpose.msrb.mxu2 %v165_v18  ;;  %v569_v18 = vld [vmem:[#allocation2 + $0x370] sm:$0xff] }
 0x124   :  { %590 = vmatpush.msra.mxu0 %v569_v18  ;;  %v702_v18 = vld [vmem:[#allocation2 + $0x458] sm:$0xff] }
 0x126   :  { %352 = vmatmul.f32.vlgmr.msrb.gmra.mxu2 %v124_v19  ;;  %v568_v19 = vld [vmem:[#allocation2 + $0x368] sm:$0xff] }
 0x127   :  { %v205_v21 = vpop.f32.mrf.mxu2  ;;  %v246_v30 = vpop.f32.mrf.mxu3  ;;  %591 = vmatpush.msra.mxu0 %v568_v19  ;;  %v701_v19 = vld [vmem:[#allocation2 + $0x450] sm:$0xff] }
 0x128   :  { %v206_v22 = vadd.f32 %v1140_v20, %v205_v21  ;;  %v126_v23 = vpop.f32.mrf.mxu0  ;;  %v167_v24 = vpop.f32.mrf.mxu1  ;;  %v247_v34 = vadd.f32 %v971_v27, %v246_v30  ;;  %v586_v21 = vld [vmem:[#allocation2 + $0x3f8] sm:$0xff]  ;;  %v564_v30 = vld [vmem:[#allocation2 + $0x348] sm:$0xff] }
 0x129   :  { %v168_v33 = vadd.f32 %v969_v0, %v167_v24  ;;  %v127_v37 = vadd.f32 %v968_v11, %v126_v23  ;;  %v567_v23 = vld [vmem:[#allocation2 + $0x360] sm:$0xff]  ;;  %612 = vmatpush.msra.mxu1 %v586_v21  ;;  %v584_v24 = vld [vmem:[#allocation2 + $0x3e8] sm:$0xff] }
 0x12a   :  { %386 = vmatpush.msrb.mxu3 %v206_v22  ;;  %v585_v22 = vld [vmem:[#allocation2 + $0x3f0] sm:$0xff]  ;;  %592 = vmatpush.msra.mxu0 %v567_v23  ;;  %v699_v21 = vld [vmem:[#allocation2 + $0x440] sm:$0xff] }
 0x12b   :  { %613 = vmatpush.msra.mxu1 %v585_v22  ;;  %v698_v22 = vld [vmem:[#allocation2 + $0x438] sm:$0xff]  ;;  %v697_v23 = vld [vmem:[#allocation2 + $0x430] sm:$0xff] }
 0x12d   :  { %614 = vmatpush.msra.mxu1 %v584_v24  ;;  %v696_v24 = vld [vmem:[#allocation2 + $0x428] sm:$0xff] }
 0x12f   :  { %v249_v38 = vpop.f32.mrf.mxu3  ;;  %v208_v40 = vpop.f32.mrf.mxu2 }
 0x130   :  { %v287_v28 = vpop.f32.mrf.mxu0  ;;  %v328_v29 = vpop.f32.mrf.mxu1  ;;  %v250_v39 = vadd.f32 %v971_v27, %v249_v38  ;;  %v209_v16 = vadd.f32 %v1140_v20, %v208_v40  ;;  %v566_v27 = vld [vmem:[#allocation2 + $0x358] sm:$0xff]  ;;  %v583_v20 = vld [vmem:[#allocation2 + $0x3e0] sm:$0xff]  ;;  %v561_v40 = vld [vmem:[#allocation2 + $0x330] sm:$0xff] }
 0x131   :  { %v288_v31 = vadd.f32 %v972_v25, %v287_v28  ;;  %v329_v32 = vadd.f32 %v1149_v26, %v328_v29  ;;  %v565_v28 = vld [vmem:[#allocation2 + $0x350] sm:$0xff]  ;;  %593 = vmatpush.msra.mxu0 %v566_v27  ;;  %v582_v29 = vld [vmem:[#allocation2 + $0x3d8] sm:$0xff]  ;;  %615 = vmatpush.msra.mxu1 %v583_v20 }
 0x132   :  { %v562_v38 = vld [vmem:[#allocation2 + $0x338] sm:$0xff]  ;;  %v693_v20 = vld [vmem:[#allocation2 + $0x410] sm:$0xff] }
 0x133   :  { %406 = vmatpush.xpose.msra.mxu2 %v288_v31  ;;  %440 = vmatpush.msra.mxu3 %v329_v32  ;;  %v581_v31 = vld [vmem:[#allocation2 + $0x3d0] sm:$0xff]  ;;  %v694_v27 = vld [vmem:[#allocation2 + $0x418] sm:$0xff] }
 0x134   :  { %594 = vmatpush.msra.mxu0 %v565_v28  ;;  %616 = vmatpush.msra.mxu1 %v582_v29  ;;  %v692_v29 = vld [vmem:[#allocation2 + $0x408] sm:$0xff] }
 0x136   :  { %407 = vmatmul.f32.vlgmr.msra.gmra.mxu2 %v247_v34  ;;  %595 = vmatpush.msra.mxu0 %v564_v30 }
 0x137   :  { %462 = vmatpush.xpose.msrb.mxu2 %v168_v33  ;;  %v563_v33 = vld [vmem:[#allocation2 + $0x340] sm:$0xff]  ;;  %617 = vmatpush.msra.mxu1 %v581_v31 }
 0x138   :  { %v290_v35 = vpop.f32.mrf.mxu0  ;;  %v331_v32 = vpop.f32.mrf.mxu1  ;;  %596 = vmatpush.msra.mxu0 %v563_v33 }
 0x139   :  { %v291_v36 = vadd.f32 %v972_v25, %v290_v35  ;;  %v580_v35 = vld [vmem:[#allocation2 + $0x3c8] sm:$0xff] }
 0x13a   :  { %618 = vmatpush.msra.mxu1 %v580_v35  ;;  %597 = vmatpush.msra.mxu0 %v562_v38 }
 0x13b   :  { %516 = vmatpush.xpose.msra.mxu2 %v291_v36 }
 0x13c   :  { %598 = vmatpush.msra.mxu0 %v561_v40 }
 0x13e   :  { %463 = vmatmul.f32.vlgmr.msrb.gmra.mxu2 %v127_v37 }
 0x146   :  { %517 = vmatmul.f32.vlgmr.msra.gmra.mxu2 %v250_v39  ;;  %v332_v39 = vadd.f32 %v1149_v26, %v331_v32  ;;  %v557_v26 = vld [vmem:[#allocation2 + $0x310] sm:$0xff]  ;;  %v691_v32 = vld [vmem:[#allocation2 + $0x400] sm:$0xff] }
 0x1a9   :  { %v353_v42 = vpop.f32.mrf.mxu2 }
 0x1aa   :  { %v354_v43 = vadd.f32 %v974_v41, %v353_v42  ;;  %v559_v42 = vld [vmem:[#allocation2 + $0x320] sm:$0xff] }
 0x1ac   :  { %v357_v44 = vsel %vm356_vm6, %v354_v43, -inf }
 0x1ad   :  { %358 = vmax.xlane.f32.xlu2 %v357_v44 }
 0x1b9   :  { %v408_v45 = vpop.f32.mrf.mxu2 }
 0x1ba   :  { %v409_v46 = vadd.f32 %v974_v41, %v408_v45  ;;  %v560_v41 = vld [vmem:[#allocation2 + $0x328] sm:$0xff] }
 0x1bb   :  { %599 = vmatpush.msra.mxu0 %v560_v41 }
 0x1bc   :  { %v411_v47 = vsel %vm356_vm6, %v409_v46, -inf }
 0x1bd   :  { %412 = vmax.xlane.f32.xlu2 %v411_v47  ;;  %600 = vmatpush.msra.mxu0 %v559_v42  ;;  %v556_v47 = vld [vmem:[#allocation2 + $0x308] sm:$0xff] }
 0x1c1   :  { %v464_v49 = vpop.f32.mrf.mxu2 }
 0x1c2   :  { %v465_v50 = vadd.f32 %v975_v48, %v464_v49 }
 0x1c4   :  { %v467_v51 = vsel %vm356_vm6, %v465_v50, -inf }
 0x1c5   :  { %468 = vmax.xlane.f32.xlu0 %v467_v51  ;;  %v579_v51 = vld [vmem:[#allocation2 + $0x3c0] sm:$0xff] }
 0x1c6   :  { %619 = vmatpush.msra.mxu1 %v579_v51 }
 0x1c9   :  { %v518_v52 = vpop.f32.mrf.mxu2 }
 0x1ca   :  { %v519_v53 = vadd.f32 %v975_v48, %v518_v52  ;;  %v578_v52 = vld [vmem:[#allocation2 + $0x3b8] sm:$0xff] }
 0x1cb   :  { %620 = vmatpush.msra.mxu1 %v578_v52 }
 0x1cc   :  { %v521_v54 = vsel %vm356_vm6, %v519_v53, -inf }
 0x1cd   :  { %522 = vmax.xlane.f32.xlu1 %v521_v54  ;;  %v576_v54 = vld [vmem:[#allocation2 + $0x3a8] sm:$0xff] }
 0x220   :  { %v359_v55 = vpop.xlane.xlu2 %358 }
 0x221   :  { %v360_v56 = vsub.f32 %v354_v43, %v359_v55  ;;  %v575_v55 = vld [vmem:[#allocation2 + $0x3a0] sm:$0xff] }
 0x223   :  { %v361_v57 = vmul.f32 1.442695, %v360_v56  ;;  %v574_v56 = vld [vmem:[#allocation2 + $0x398] sm:$0xff] }
 0x225   :  { %988 = vpow2.f32 %v361_v57  ;;  %v573_v57 = vld [vmem:[#allocation2 + $0x390] sm:$0xff] }
 0x22b   :  { %v989_v58 = vpop.eup %988 }
 0x22c   :  { %v363_v59 = vsel %vm356_vm6, %v989_v58, 0.0 }
 0x22d   :  { %364 = vadd.xlane.f32.xlu2 %v363_v59  ;;  %v571_v59 = vld [vmem:[#allocation2 + $0x380] sm:$0xff] }
 0x230   :  { %v413_v60 = vpop.xlane.xlu2 %412 }
 0x231   :  { %v414_v61 = vsub.f32 %v409_v46, %v413_v60  ;;  %v558_v46 = vld [vmem:[#allocation2 + $0x318] sm:$0xff] }
 0x232   :  { %601 = vmatpush.msra.mxu0 %v558_v46  ;;  %v764_v46 = vld [vmem:[#allocation2 + $0x4f0] sm:$0xff] }
 0x233   :  { %v415_v62 = vmul.f32 1.442695, %v414_v61 }
 0x234   :  { %602 = vmatpush.msra.mxu0 %v557_v26 }
 0x235   :  { %990 = vpow2.f32 %v415_v62 }
 0x236   :  { %603 = vmatpush.msra.mxu0 %v556_v47 }
 0x238   :  { %v469_v63 = vpop.xlane.xlu0 %468 }
 0x239   :  { %v470_v2 = vsub.f32 %v465_v50, %v469_v63  ;;  %v555_v50 = vld [vmem:[#allocation2 + $0x300] sm:$0xff] }
 0x23a   :  { %604 = vmatpush.msra.mxu0 %v555_v50 }
 0x23b   :  { %v991_v3 = vpop.eup %990  ;;  %v471_v4 = vmul.f32 1.442695, %v470_v2  ;;  %v976_v2 = vld [vmem:[%s1255_s2 + $0x8] ss:$0 sm:$0xff] }
 0x23c   :  { %v417_v5 = vsel %vm356_vm6, %v991_v3, 0.0 }
 0x23d   :  { %992 = vpow2.f32 %v471_v4  ;;  %418 = vadd.xlane.f32.xlu0 %v417_v5 }
 0x240   :  { %v523_v6 = vpop.xlane.xlu1 %522 }
 0x241   :  { %v524_v7 = vsub.f32 %v519_v53, %v523_v6  ;;  %v577_v53 = vld [vmem:[#allocation2 + $0x3b0] sm:$0xff] }
 0x242   :  { %621 = vmatpush.msra.mxu1 %v577_v53 }
 0x243   :  { %v1167_v8 = vpop.eup %992  ;;  %v525_v9 = vmul.f32 1.442695, %v524_v7 }
 0x244   :  { %v473_v10 = vsel %vm356_vm6, %v1167_v8, 0.0  ;;  %622 = vmatpush.msra.mxu1 %v576_v54 }
 0x245   :  { %994 = vpow2.f32 %v525_v9  ;;  %474 = vadd.xlane.f32.xlu1 %v473_v10 }
 0x246   :  { %623 = vmatpush.msra.mxu1 %v575_v55  ;;  %v977_v55 = vld [vmem:[%s1255_s2 + $0x9] ss:$0 sm:$0xff] }
 0x248   :  { %624 = vmatpush.msra.mxu1 %v574_v56 }
 0x24a   :  { %625 = vmatpush.msra.mxu1 %v573_v57 }
 0x24b   :  { %v1171_v12 = vpop.eup %994 }
 0x24c   :  { %v527_v13 = vsel %vm356_vm6, %v1171_v12, 0.0 }
 0x24d   :  { %528 = vadd.xlane.f32.xlu2 %v527_v13 }
 0x2a0   :  { %v365_v14 = vpop.xlane.xlu2 %364 }
 0x2a1   :  { %996 = vrcp.f32 %v365_v14 }
 0x2a7   :  { %v997_v0 = vpop.eup %996 }
 0x2a8   :  { %v367_v11 = vmul.f32 %v997_v0, %v989_v58  ;;  %v572_v58 = vld [vmem:[#allocation2 + $0x388] sm:$0xff] }
 0x2a9   :  { %626 = vmatpush.msra.mxu1 %v572_v58  ;;  %v978_v58 = vld [vmem:[%s1255_s2 + $0xa] ss:$0 sm:$0xff] }
 0x2aa   :  { %941 = vmatmul.msk.f32.vlgmr.msrb.gmra.mxu3 %vm356_vm6, %v367_v11  ;;  %v705_v11 = vld [vmem:[#allocation2 + $0x470] sm:$0xff] }
 0x2ab   :  { %496 = vmatpush.msrb.mxu3 %v209_v16  ;;  %627 = vmatpush.msra.mxu1 %v571_v59  ;;  %v704_v16 = vld [vmem:[#allocation2 + $0x468] sm:$0xff] }
 0x2b0   :  { %v419_v25 = vpop.xlane.xlu0 %418 }
 0x2b1   :  { %998 = vrcp.f32 %v419_v25  ;;  %v695_v25 = vld [vmem:[#allocation2 + $0x420] sm:$0xff] }
 0x2b7   :  { %v999_v34 = vpop.eup %998 }
 0x2b8   :  { %v421_v36 = vmul.f32 %v999_v34, %v991_v3  ;;  %v475_v37 = vpop.xlane.xlu1 %474 }
 0x2b9   :  { %1000 = vrcp.f32 %v475_v37 }
 0x2ba   :  { %942 = vmatmul.msk.f32.vlgmr.msra.gmra.mxu3 %vm356_vm6, %v421_v36 }
 0x2bb   :  { %550 = vmatpush.msra.mxu3 %v332_v39 }
 0x2bf   :  { %v1001_v43 = vpop.eup %1000 }
 0x2c0   :  { %v477_v44 = vmul.f32 %v1001_v43, %v1167_v8  ;;  %v529_v45 = vpop.xlane.xlu2 %528 }
 0x2c1   :  { %1002 = vrcp.f32 %v529_v45  ;;  %v765_v45 = vld [vmem:[#allocation2 + $0x4f8] sm:$0xff] }
 0x2c2   :  { %943 = vmatmul.msk.f32.vlgmr.msrb.gmra.mxu3 %vm356_vm6, %v477_v44 }
 0x2c3   :  { %768 = vmatpush.msrb.mxu3 %v765_v45  ;;  %v980_v45 = vld [vmem:[%s1255_s2 + $0xc] ss:$0 sm:$0xff] }
 0x2c5   :  { %769 = vmatpush.msrb.mxu3 %v764_v46 }
 0x2c7   :  { %v1003_v48 = vpop.eup %1002 }
 0x2c8   :  { %v531_v49 = vmul.f32 %v1003_v48, %v1171_v12  ;;  %v763_v48 = vld [vmem:[#allocation2 + $0x4e8] sm:$0xff] }
 0x2c9   :  { %770 = vmatpush.msrb.mxu3 %v763_v48 }
 0x2ca   :  { %944 = vmatmul.msk.f32.vlgmr.msra.gmra.mxu3 %vm356_vm6, %v531_v49 }
 0x32d   :  { %v388_v60 = vpop.f32.mrf.mxu3 }
 0x32e   :  { %605 = vmatmul.f32.vlgmr.msra.gmra.mxu0 %v388_v60 }
 0x33d   :  { %v442_v61 = vpop.f32.mrf.mxu3 }
 0x33e   :  { %628 = vmatmul.f32.vlgmr.msra.gmra.mxu1 %v442_v61 }
 0x345   :  { %v498_v62 = vpop.f32.mrf.mxu3 }
 0x346   :  { %608 = vmatmul.f32.gmra.mxu0 %v498_v62 }
 0x34d   :  { %v552_v63 = vpop.f32.mrf.mxu3 }
 0x34e   :  { %631 = vmatmul.f32.gmra.mxu1 %v552_v63 }
 0x3ab   :  { %v606_v3 = vpop.f32.mrf.mxu0 }
 0x3ac   :  { %v607_v4 = vadd.f32 %v976_v2, %v606_v3 }
 0x3bb   :  { %v629_v5 = vpop.f32.mrf.mxu1 }
 0x3bc   :  { %v630_v6 = vadd.f32 %v629_v5, %v607_v4 }
 0x3be   :  { %v1187_v7 = vadd.f32 %v630_v6, %v1115_v1  ;;  %v706_v1 = vld [vmem:[#allocation2 + $0x478] sm:$0xff] }
 0x3bf   :  { %709 = vmatpush.msrb.mxu2 %v706_v1  ;;  %v758_v1 = vld [vmem:[#allocation2 + $0x4c0] sm:$0xff] }
 0x3c0   :  { %637 = vadd.xlane.f32.xlu0 %v1187_v7  ;;  %v643_v8 = vmul.f32 %v1187_v7, %v1187_v7 }
 0x3c1   :  { %710 = vmatpush.msrb.mxu2 %v705_v11  ;;  %v757_v11 = vld [vmem:[#allocation2 + $0x4b8] sm:$0xff] }
 0x3c2   :  { %645 = vadd.xlane.f32.xlu1 %v643_v8 }
 0x3c3   :  { %v609_v9 = vpop.f32.mrf.mxu0  ;;  %711 = vmatpush.msrb.mxu2 %v704_v16  ;;  %v755_v16 = vld [vmem:[#allocation2 + $0x4a8] sm:$0xff] }
 0x3c4   :  { %v610_v10 = vadd.f32 %v976_v2, %v609_v9 }
 0x3c5   :  { %712 = vmatpush.msrb.mxu2 %v703_v17  ;;  %v754_v17 = vld [vmem:[#allocation2 + $0x4a0] sm:$0xff] }
 0x3c7   :  { %713 = vmatpush.msrb.mxu2 %v702_v18  ;;  %v753_v18 = vld [vmem:[#allocation2 + $0x498] sm:$0xff] }
 0x3c9   :  { %714 = vmatpush.msrb.mxu2 %v701_v19  ;;  %v752_v19 = vld [vmem:[#allocation2 + $0x490] sm:$0xff] }
 0x3cb   :  { %v632_v12 = vpop.f32.mrf.mxu1 }
 0x3cc   :  { %v633_v13 = vadd.f32 %v632_v12, %v610_v10  ;;  %v762_v10 = vld [vmem:[#allocation2 + $0x4e0] sm:$0xff]  ;;  %v761_v12 = vld [vmem:[#allocation2 + $0x4d8] sm:$0xff] }
 0x3cd   :  { %771 = vmatpush.msrb.mxu3 %v762_v10 }
 0x3ce   :  { %v1193_v14 = vadd.f32 %v633_v13, %v1121_v15  ;;  %v700_v15 = vld [vmem:[#allocation2 + $0x448] sm:$0xff]  ;;  %v760_v13 = vld [vmem:[#allocation2 + $0x4d0] sm:$0xff] }
 0x3cf   :  { %715 = vmatpush.msrb.mxu2 %v700_v15  ;;  %772 = vmatpush.msrb.mxu3 %v761_v12  ;;  %v751_v15 = vld [vmem:[#allocation2 + $0x488] sm:$0xff] }
 0x3d0   :  { %639 = vadd.xlane.f32.xlu2 %v1193_v14  ;;  %v644_v0 = vmul.f32 %v1193_v14, %v1193_v14 }
 0x3d1   :  { %716 = vmatpush.msrb.mxu2 %v699_v21  ;;  %773 = vmatpush.msrb.mxu3 %v760_v13  ;;  %v750_v21 = vld [vmem:[#allocation2 + $0x480] sm:$0xff] }
 0x3d2   :  { %647 = vadd.xlane.f32.xlu0 %v644_v0  ;;  %v759_v0 = vld [vmem:[#allocation2 + $0x4c8] sm:$0xff] }
 0x3d3   :  { %717 = vmatpush.msrb.mxu2 %v698_v22  ;;  %774 = vmatpush.msrb.mxu3 %v759_v0  ;;  %v979_v22 = vld [vmem:[%s1255_s2 + $0xb] ss:$0 sm:$0xff] }
 0x3d5   :  { %718 = vmatpush.msrb.mxu2 %v697_v23  ;;  %775 = vmatpush.msrb.mxu3 %v758_v1 }
 0x3d7   :  { %719 = vmatpush.msrb.mxu2 %v696_v24  ;;  %776 = vmatpush.msrb.mxu3 %v757_v11 }
 0x3d9   :  { %720 = vmatpush.msrb.mxu2 %v695_v25 }
 0x3db   :  { %721 = vmatpush.msrb.mxu2 %v694_v27 }
 0x3dd   :  { %722 = vmatpush.msrb.mxu2 %v693_v20 }
 0x3df   :  { %723 = vmatpush.msrb.mxu2 %v692_v29 }
 0x3e1   :  { %724 = vmatpush.msrb.mxu2 %v691_v32 }
 0x433   :  { %v638_v28 = vpop.xlane.xlu0 %637 }
 0x434   :  { %v641_v30 = vmul.f32 0.03125, %v638_v28 }
 0x435   :  { %v646_v31 = vpop.xlane.xlu1 %645 }
 0x436   :  { %v651_v33 = vmul.f32 %v641_v30, %v641_v30  ;;  %v649_v34 = vmul.f32 0.03125, %v646_v31  ;;  %v657_v54 = vsub.f32 %v1187_v7, %v641_v30 }
 0x438   :  { %v653_v35 = vsub.f32 %v649_v34, %v651_v33 }
 0x43a   :  { %v655_v36 = vmax.f32 %v653_v35, 0.0 }
 0x43c   :  { %v659_v37 = vadd.f32 1e-12, %v655_v36 }
 0x43e   :  { %1004 = vrsqrt.f32 %v659_v37  ;;  %vm667_vm8 = vweird.f32 %v659_v37 }
 0x443   :  { %v640_v38 = vpop.xlane.xlu2 %639 }
 0x444   :  { %v1005_v39 = vpop.eup %1004  ;;  %v642_v40 = vmul.f32 0.03125, %v640_v38 }
 0x445   :  { %v662_v41 = vmul.f32 %v1005_v39, %v659_v37  ;;  %v648_v42 = vpop.xlane.xlu0 %647  ;;  %vm668_vm7 = vweird.f32 %v1005_v39 }
 0x446   :  { %v652_v43 = vmul.f32 %v642_v40, %v642_v40  ;;  %v650_v44 = vmul.f32 0.03125, %v648_v42  ;;  %vm669_vm9 = vmor %vm667_vm8, %vm668_vm7  ;;  %v658_v5 = vsub.f32 %v1193_v14, %v642_v40  ;;  %v756_v14 = vld [vmem:[#allocation2 + $0x4b0] sm:$0xff] }
 0x447   :  { %v663_v26 = vmul.f32 %v1005_v39, %v662_v41  ;;  %777 = vmatpush.msrb.mxu3 %v756_v14 }
 0x448   :  { %v654_v47 = vsub.f32 %v650_v44, %v652_v43 }
 0x449   :  { %v664_v49 = vmul.f32 0.5, %v663_v26  ;;  %778 = vmatpush.msrb.mxu3 %v755_v16 }
 0x44a   :  { %v656_v50 = vmax.f32 %v654_v47, 0.0 }
 0x44b   :  { %v665_v51 = vsub.f32 1.5, %v664_v49  ;;  %779 = vmatpush.msrb.mxu3 %v754_v17 }
 0x44c   :  { %v660_v52 = vadd.f32 1e-12, %v656_v50 }
 0x44d   :  { %v666_v53 = vmul.f32 %v1005_v39, %v665_v51  ;;  %780 = vmatpush.msrb.mxu3 %v753_v18 }
 0x44e   :  { %1006 = vrsqrt.f32 %v660_v52  ;;  %vm677_vm11 = vweird.f32 %v660_v52 }
 0x44f   :  { %v670_v56 = vsel %vm669_vm9, %v1005_v39, %v666_v53  ;;  %781 = vmatpush.msrb.mxu3 %v752_v19  ;;  %v864_v53 = vld [vmem:[#allocation2 + $0x578] sm:$0xff] }
 0x450   :  { %v681_v57 = vmul.f32 %v670_v56, %v657_v54  ;;  %867 = vmatpush.msrb.mxu0 %v864_v53  ;;  %947 = vmatpush.msrb.mxu1 %v864_v53  ;;  %v863_v54 = vld [vmem:[#allocation2 + $0x570] sm:$0xff]  ;;  %v861_v56 = vld [vmem:[#allocation2 + $0x560] sm:$0xff] }
 0x451   :  { %782 = vmatpush.msrb.mxu3 %v751_v15 }
 0x452   :  { %v685_v59 = vmul.f32 %v977_v55, %v681_v57  ;;  %868 = vmatpush.msrb.mxu0 %v863_v54  ;;  %948 = vmatpush.msrb.mxu1 %v863_v54  ;;  %v860_v57 = vld [vmem:[#allocation2 + $0x558] sm:$0xff] }
 0x453   :  { %783 = vmatpush.msrb.mxu3 %v750_v21 }
 0x454   :  { %v1007_v60 = vpop.eup %1006  ;;  %v1205_v61 = vadd.f32 %v978_v58, %v685_v59  ;;  %v858_v59 = vld [vmem:[#allocation2 + $0x548] sm:$0xff] }
 0x455   :  { %v672_v62 = vmul.f32 %v1007_v60, %v660_v52  ;;  %vm678_vm10 = vweird.f32 %v1007_v60 }
 0x456   :  { %725 = vmatmul.f32.vlgmr.msrb.gmra.mxu2 %v1205_v61  ;;  %vm679_vm12 = vmor %vm677_vm11, %vm678_vm10 }
 0x457   :  { %v673_v63 = vmul.f32 %v1007_v60, %v672_v62  ;;  %v855_v62 = vld [vmem:[#allocation2 + $0x530] sm:$0xff] }
 0x459   :  { %v674_v2 = vmul.f32 0.5, %v673_v63  ;;  %v854_v63 = vld [vmem:[#allocation2 + $0x528] sm:$0xff] }
 0x45b   :  { %v675_v3 = vsub.f32 1.5, %v674_v2  ;;  %v853_v2 = vld [vmem:[#allocation2 + $0x520] sm:$0xff] }
 0x45d   :  { %v676_v4 = vmul.f32 %v1007_v60, %v675_v3  ;;  %v852_v3 = vld [vmem:[#allocation2 + $0x518] sm:$0xff] }
 0x45f   :  { %v680_v6 = vsel %vm679_vm12, %v1007_v60, %v676_v4  ;;  %v857_v60 = vld [vmem:[#allocation2 + $0x540] sm:$0xff]  ;;  %v851_v4 = vld [vmem:[#allocation2 + $0x510] sm:$0xff] }
 0x460   :  { %v682_v7 = vmul.f32 %v680_v6, %v658_v5  ;;  %v850_v6 = vld [vmem:[#allocation2 + $0x508] sm:$0xff] }
 0x462   :  { %v686_v8 = vmul.f32 %v977_v55, %v682_v7  ;;  %v862_v55 = vld [vmem:[#allocation2 + $0x568] sm:$0xff] }
 0x463   :  { %869 = vmatpush.msrb.mxu0 %v862_v55  ;;  %949 = vmatpush.msrb.mxu1 %v862_v55 }
 0x464   :  { %v1209_v9 = vadd.f32 %v978_v58, %v686_v8  ;;  %v859_v58 = vld [vmem:[#allocation2 + $0x550] sm:$0xff] }
 0x465   :  { %870 = vmatpush.msrb.mxu0 %v861_v56  ;;  %950 = vmatpush.msrb.mxu1 %v861_v56 }
 0x466   :  { %728 = vmatmul.f32.gmra.mxu2 %v1209_v9 }
 0x467   :  { %871 = vmatpush.msrb.mxu0 %v860_v57  ;;  %951 = vmatpush.msrb.mxu1 %v860_v57 }
 0x469   :  { %872 = vmatpush.msrb.mxu0 %v859_v58  ;;  %952 = vmatpush.msrb.mxu1 %v859_v58 }
 0x46b   :  { %873 = vmatpush.msrb.mxu0 %v858_v59  ;;  %953 = vmatpush.msrb.mxu1 %v858_v59 }
 0x46d   :  { %874 = vmatpush.msrb.mxu0 %v857_v60  ;;  %954 = vmatpush.msrb.mxu1 %v857_v60 }
 0x4d9   :  { %v726_v23 = vpop.f32.mrf.mxu2 }
 0x4da   :  { %v727_v24 = vadd.f32 %v979_v22, %v726_v23 }
 0x4dc   :  { %v732_v25 = vmul.f32 %v727_v24, %v727_v24 }
 0x4de   :  { %v734_v27 = vmul.f32 %v732_v25, %v727_v24 }
 0x4e0   :  { %v736_v20 = vmul.f32 0.044715, %v734_v27 }
 0x4e2   :  { %v738_v28 = vadd.f32 %v736_v20, %v727_v24 }
 0x4e4   :  { %v740_v29 = vmul.f32 0.7978846, %v738_v28 }
 0x4e6   :  { %1008 = vtanh.f32 %v740_v29  ;;  %v981_v29 = vld [vmem:[%s1255_s2 + $0xd] ss:$0 sm:$0xff] }
 0x4e9   :  { %v729_v30 = vpop.f32.mrf.mxu2 }
 0x4ea   :  { %v730_v31 = vadd.f32 %v979_v22, %v729_v30 }
 0x4ec   :  { %v1009_v32 = vpop.eup %1008  ;;  %v733_v33 = vmul.f32 %v730_v31, %v730_v31 }
 0x4ed   :  { %v744_v34 = vadd.f32 1.0, %v1009_v32  ;;  %v982_v32 = vld [vmem:[%s1255_s2 + $0xe] ss:$0 sm:$0xff] }
 0x4ee   :  { %v735_v35 = vmul.f32 %v733_v33, %v730_v31 }
 0x4ef   :  { %v746_v36 = vmul.f32 0.5, %v744_v34 }
 0x4f0   :  { %v737_v37 = vmul.f32 0.044715, %v735_v35 }
 0x4f1   :  { %v748_v38 = vmul.f32 %v746_v36, %v727_v24 }
 0x4f2   :  { %v739_v39 = vadd.f32 %v737_v37, %v730_v31 }
 0x4f3   :  { %784 = vmatmul.f32.vlgmr.msrb.gmra.mxu3 %v748_v38 }
 0x4f4   :  { %v741_v40 = vmul.f32 0.7978846, %v739_v39 }
 0x4f6   :  { %1010 = vtanh.f32 %v741_v40 }
 0x4fc   :  { %v1011_v41 = vpop.eup %1010 }
 0x4fd   :  { %v745_v42 = vadd.f32 1.0, %v1011_v41 }
 0x4ff   :  { %v747_v43 = vmul.f32 0.5, %v745_v42 }
 0x501   :  { %v749_v44 = vmul.f32 %v747_v43, %v730_v31 }
 0x503   :  { %787 = vmatmul.f32.gmra.mxu3 %v749_v44 }
 0x576   :  { %v785_v46 = vpop.f32.mrf.mxu3 }
 0x577   :  { %v786_v26 = vadd.f32 %v980_v45, %v785_v46  ;;  %v983_v46 = vld [vmem:[%s1255_s2 + $0xf] ss:$0 sm:$0xff] }
 0x579   :  { %v1219_v47 = vadd.f32 %v786_v26, %v1205_v61  ;;  %v856_v61 = vld [vmem:[#allocation2 + $0x538] sm:$0xff] }
 0x57a   :  { %875 = vmatpush.msrb.mxu0 %v856_v61  ;;  %955 = vmatpush.msrb.mxu1 %v856_v61 }
 0x57b   :  { %793 = vadd.xlane.f32.xlu1 %v1219_v47  ;;  %v799_v48 = vmul.f32 %v1219_v47, %v1219_v47 }
 0x57c   :  { %876 = vmatpush.msrb.mxu0 %v855_v62  ;;  %956 = vmatpush.msrb.mxu1 %v855_v62 }
 0x57d   :  { %801 = vadd.xlane.f32.xlu0 %v799_v48 }
 0x57e   :  { %877 = vmatpush.msrb.mxu0 %v854_v63  ;;  %957 = vmatpush.msrb.mxu1 %v854_v63 }
 0x580   :  { %878 = vmatpush.msrb.mxu0 %v853_v2  ;;  %958 = vmatpush.msrb.mxu1 %v853_v2 }
 0x582   :  { %879 = vmatpush.msrb.mxu0 %v852_v3  ;;  %959 = vmatpush.msrb.mxu1 %v852_v3 }
 0x584   :  { %880 = vmatpush.msrb.mxu0 %v851_v4  ;;  %960 = vmatpush.msrb.mxu1 %v851_v4 }
 0x586   :  { %v788_v49 = vpop.f32.mrf.mxu3  ;;  %881 = vmatpush.msrb.mxu0 %v850_v6  ;;  %961 = vmatpush.msrb.mxu1 %v850_v6 }
 0x587   :  { %v789_v50 = vadd.f32 %v980_v45, %v788_v49 }
 0x589   :  { %v1225_v51 = vadd.f32 %v789_v50, %v1209_v9  ;;  %v849_v9 = vld [vmem:[#allocation2 + $0x500] sm:$0xff] }
 0x58a   :  { %882 = vmatpush.msrb.mxu0 %v849_v9  ;;  %962 = vmatpush.msrb.mxu1 %v849_v9 }
 0x58b   :  { %795 = vadd.xlane.f32.xlu2 %v1225_v51  ;;  %v800_v52 = vmul.f32 %v1225_v51, %v1225_v51 }
 0x58d   :  { %803 = vadd.xlane.f32.xlu1 %v800_v52 }
 0x5ee   :  { %v794_v5 = vpop.xlane.xlu1 %793 }
 0x5ef   :  { %v797_v7 = vmul.f32 0.03125, %v794_v5 }
 0x5f0   :  { %v802_v8 = vpop.xlane.xlu0 %801 }
 0x5f1   :  { %v807_v10 = vmul.f32 %v797_v7, %v797_v7  ;;  %v805_v12 = vmul.f32 0.03125, %v802_v8  ;;  %v813_v28 = vsub.f32 %v1219_v47, %v797_v7 }
 0x5f3   :  { %v809_v13 = vsub.f32 %v805_v12, %v807_v10 }
 0x5f5   :  { %v811_v0 = vmax.f32 %v809_v13, 0.0 }
 0x5f7   :  { %v815_v1 = vadd.f32 1e-12, %v811_v0 }
 0x5f9   :  { %1012 = vrsqrt.f32 %v815_v1  ;;  %vm823_vm14 = vweird.f32 %v815_v1 }
 0x5fe   :  { %v796_v11 = vpop.xlane.xlu2 %795 }
 0x5ff   :  { %v1013_v14 = vpop.eup %1012  ;;  %v798_v16 = vmul.f32 0.03125, %v796_v11 }
 0x600   :  { %v818_v17 = vmul.f32 %v1013_v14, %v815_v1  ;;  %v804_v18 = vpop.xlane.xlu1 %803  ;;  %vm824_vm13 = vweird.f32 %v1013_v14 }
 0x601   :  { %v808_v19 = vmul.f32 %v798_v16, %v798_v16  ;;  %v806_v15 = vmul.f32 0.03125, %v804_v18  ;;  %vm825_vm15 = vmor %vm823_vm14, %vm824_vm13  ;;  %v814_v41 = vsub.f32 %v1225_v51, %v798_v16 }
 0x602   :  { %v819_v21 = vmul.f32 %v1013_v14, %v818_v17 }
 0x603   :  { %v810_v22 = vsub.f32 %v806_v15, %v808_v19 }
 0x604   :  { %v820_v23 = vmul.f32 0.5, %v819_v21 }
 0x605   :  { %v812_v24 = vmax.f32 %v810_v22, 0.0 }
 0x606   :  { %v821_v25 = vsub.f32 1.5, %v820_v23 }
 0x607   :  { %v816_v27 = vadd.f32 1e-12, %v812_v24 }
 0x608   :  { %v822_v20 = vmul.f32 %v1013_v14, %v821_v25 }
 0x609   :  { %1014 = vrsqrt.f32 %v816_v27  ;;  %vm833_vm1 = vweird.f32 %v816_v27 }
 0x60a   :  { %v826_v30 = vsel %vm825_vm15, %v1013_v14, %v822_v20 }
 0x60b   :  { %v837_v31 = vmul.f32 %v826_v30, %v813_v28 }
 0x60d   :  { %v841_v33 = vmul.f32 %v981_v29, %v837_v31 }
 0x60f   :  { %v1015_v34 = vpop.eup %1014  ;;  %v845_v35 = vadd.f32 %v982_v32, %v841_v33 }
 0x610   :  { %v828_v36 = vmul.f32 %v1015_v34, %v816_v27  ;;  %vm834_vm0 = vweird.f32 %v1015_v34 }
 0x611   :  { %847 = vst [vmem:[%s1256_s3] sm:$0xff] %v845_v35  ;;  %883 = vmatmul.f32.vlgmr.msrb.gmra.mxu0 %v845_v35  ;;  %vm835_vm2 = vmor %vm833_vm1, %vm834_vm0 }
 0x612   :  { %v829_v37 = vmul.f32 %v1015_v34, %v828_v36 }
 0x614   :  { %v830_v38 = vmul.f32 0.5, %v829_v37 }
 0x616   :  { %v831_v39 = vsub.f32 1.5, %v830_v38 }
 0x618   :  { %v832_v40 = vmul.f32 %v1015_v34, %v831_v39 }
 0x61a   :  { %v836_v42 = vsel %vm835_vm2, %v1015_v34, %v832_v40 }
 0x61b   :  { %v838_v43 = vmul.f32 %v836_v42, %v814_v41 }
 0x61d   :  { %v842_v44 = vmul.f32 %v981_v29, %v838_v43 }
 0x61f   :  { %v846_v45 = vadd.f32 %v982_v32, %v842_v44 }
 0x621   :  { %848 = vst [vmem:[%s1256_s3 + $0x8] sm:$0xff] %v846_v45  ;;  %886 = vmatmul.f32.vlgmr.msrb.gmra.mxu1 %v846_v45 }
 0x68e   :  { %v884_v26 = vpop.f32.mrf.mxu0 }
 0x68f   :  { %v885_v47 = vadd.f32 %v983_v46, %v884_v26 }
 0x691   :  { %v945_v48 = vmul.f32 -1.442695, %v885_v47 }
 0x693   :  { %1016 = vpow2.f32 %v945_v48 }
 0x699   :  { %v1017_v49 = vpop.eup %1016 }
 0x69a   :  { %v896_v50 = vadd.f32 1.0, %v1017_v49 }
 0x69c   :  { %1018 = vrcp.f32 %v896_v50  ;;  %v909_v57 = vand.u32 2147483648, %v896_v50  ;;  %v907_v59 = vand.u32 2147483647, %v896_v50  ;;  %vm903_vm4 = vweird.f32 %v896_v50 }
 0x69e   :  { %v887_v51 = vpop.f32.mrf.mxu1  ;;  %v910_v62 = vor.u32 1.1754944e-38, %v909_v57  ;;  %vm908_vm6 = vcmp.eq.f32.partialorder %v907_v59, 8.507059e+37 }
 0x69f   :  { %v888_v52 = vadd.f32 %v983_v46, %v887_v51 }
 0x6a1   :  { %v946_v53 = vmul.f32 -1.442695, %v888_v52 }
 0x6a2   :  { %v1019_v54 = vpop.eup %1018 }
 0x6a3   :  { %v899_v55 = vmul.f32 %v1019_v54, %v896_v50  ;;  %1020 = vpow2.f32 %v946_v53  ;;  %vm904_vm3 = vweird.f32 %v1019_v54 }
 0x6a4   :  { %vm905_vm5 = vmor %vm903_vm4, %vm904_vm3 }
 0x6a5   :  { %v900_v56 = vsub.f32 1.0, %v899_v55 }
 0x6a7   :  { %v901_v58 = vmul.f32 %v1019_v54, %v900_v56 }
 0x6a9   :  { %v1021_v60 = vpop.eup %1020  ;;  %v902_v61 = vadd.f32 %v1019_v54, %v901_v58 }
 0x6aa   :  { %v897_v63 = vadd.f32 1.0, %v1021_v60 }
 0x6ab   :  { %v906_v2 = vsel %vm905_vm5, %v1019_v54, %v902_v61 }
 0x6ac   :  { %v911_v3 = vsel %vm908_vm6, %v910_v62, %v906_v2  ;;  %1022 = vrcp.f32 %v897_v63  ;;  %v924_v8 = vand.u32 2147483648, %v897_v63  ;;  %v922_v10 = vand.u32 2147483647, %v897_v63 }
 0x6ad   :  { %v928_v4 = vmul.f32 %v911_v3, %v911_v3  ;;  %vm918_vm8 = vweird.f32 %v897_v63 }
 0x6ae   :  { %v925_v13 = vor.u32 1.1754944e-38, %v924_v8  ;;  %vm923_vm10 = vcmp.eq.f32.partialorder %v922_v10, 8.507059e+37 }
 0x6af   :  { %930 = vst [vmem:[%s1257_s4] sm:$0xff] %v928_v4 }
 0x6b2   :  { %v1023_v5 = vpop.eup %1022 }
 0x6b3   :  { %v914_v6 = vmul.f32 %v1023_v5, %v897_v63  ;;  %vm919_vm7 = vweird.f32 %v1023_v5 }
 0x6b4   :  { %vm920_vm9 = vmor %vm918_vm8, %vm919_vm7 }
 0x6b5   :  { %v915_v7 = vsub.f32 1.0, %v914_v6 }
 0x6b7   :  { %v916_v9 = vmul.f32 %v1023_v5, %v915_v7 }
 0x6b9   :  { %v917_v12 = vadd.f32 %v1023_v5, %v916_v9 }
 0x6bb   :  { %v921_v0 = vsel %vm920_vm9, %v1023_v5, %v917_v12 }
 0x6bc   :  { %v926_v1 = vsel %vm923_vm10, %v925_v13, %v921_v0 }
 0x6bd   :  { %v929_v11 = vmul.f32 %v926_v1, %v926_v1 }
 0x6bf   :  { %931 = vst [vmem:[%s1257_s4 + $0x8] sm:$0xff] %v929_v11 }
 0x6c0   :  { %940 = vsyncpa [#allocation3], 1 }

</bundles_post_ra>
